<compile_context>
chip_gen: v7x
topology: tpu7x:2x2x1
jax: 0.10.0
libtpu: 0.0.40
codegen_flags: <defaults>
</compile_context>

<pallas_src>
import jax
import jax.numpy as jnp
from jax.experimental import pallas as pl
from jax.experimental.pallas import tpu as pltpu

_SOBEL_EPS = 1e-6   # kornia sobel magnitude eps
_NORM_EPS = 1e-6    # kornia normalize_min_max eps


def _mixed_adaptive_kernel(thr_ref, img_ref, rnd_ref, heat_ref, samp_ref, pad_ref):
    """One grid step processes TB images; pad_ref is a (H+2, W+2) halo scratch."""
    TB, C, H, W = img_ref.shape
    thr = thr_ref[0]                      # droprate threshold (SMEM scalar)

    def fill_halo(plane, *, replicate, fill=0.0):
        # Interior.
        pad_ref[pl.ds(1, H), pl.ds(1, W)] = plane
        if replicate:
            # Replicate columns first, then rows (rows re-read the padded row,
            # so the four corners replicate correctly too).
            pad_ref[pl.ds(1, H), pl.ds(0, 1)] = plane[:, :1]
            pad_ref[pl.ds(1, H), pl.ds(W + 1, 1)] = plane[:, W - 1:]
            pad_ref[pl.ds(0, 1), :] = pad_ref[pl.ds(1, 1), :]
            pad_ref[pl.ds(H + 1, 1), :] = pad_ref[pl.ds(H, 1), :]
        else:
            # Constant fill.  For {0,1} planes, 0.0 (dilation) / 1.0 (erosion)
            # matches kornia's geodesic +/-max_val border exactly.
            col = jnp.full((H, 1), fill, jnp.float32)
            row = jnp.full((1, W + 2), fill, jnp.float32)
            pad_ref[pl.ds(1, H), pl.ds(0, 1)] = col
            pad_ref[pl.ds(1, H), pl.ds(W + 1, 1)] = col
            pad_ref[pl.ds(0, 1), :] = row
            pad_ref[pl.ds(H + 1, 1), :] = row

    def nb(dr, dc):
        # Shifted (H, W) load: result[r, c] = padded_plane[r + dr, c + dc].
        return pad_ref[pl.ds(1 + dr, H), pl.ds(1 + dc, W)]

    neighbours = ((-1, -1), (-1, 0), (-1, 1),
                  (0, -1), (0, 0), (0, 1),
                  (1, -1), (1, 0), (1, 1))

    for tb in range(TB):                  # TB is small & static: unroll
        # --- Sobel magnitude (kernels /8, replicate padding), summed over C.
        edge = jnp.zeros((H, W), jnp.float32)
        for c in range(C):
            fill_halo(img_ref[tb, c].astype(jnp.float32), replicate=True)
            tl, tc_, tr = nb(-1, -1), nb(-1, 0), nb(-1, 1)
            ml, mr = nb(0, -1), nb(0, 1)
            bl, bc, br = nb(1, -1), nb(1, 0), nb(1, 1)
            gx = ((tr + 2.0 * mr + br) - (tl + 2.0 * ml + bl)) * 0.125
            gy = ((bl + 2.0 * bc + br) - (tl + 2.0 * tc_ + tr)) * 0.125
            edge = edge + jnp.sqrt(gx * gx + gy * gy + _SOBEL_EPS)

        # --- binariser(edge, droprate): forward value is hard {0, 1}.
        hard_edge = (edge >= thr).astype(jnp.float32)

        # --- closing(hard_edge, ones(3,3)) = erosion(dilation(.)).
        fill_halo(hard_edge, replicate=False, fill=0.0)      # dilation border
        dil = nb(-1, -1)
        for dr, dc in neighbours[1:]:
            dil = jnp.maximum(dil, nb(dr, dc))
        fill_halo(dil, replicate=False, fill=1.0)            # erosion border
        morph = nb(-1, -1)
        for dr, dc in neighbours[1:]:
            morph = jnp.minimum(morph, nb(dr, dc))

        # --- random map, uniform [0, 1) (torch.rand_like), streamed input.
        rnd = rnd_ref[tb, 0].astype(jnp.float32)

        # --- heat map: per-image normalize_min_max(edge + morph + random).
        s = edge + morph + rnd
        s_min = jnp.min(jnp.min(s, axis=1, keepdims=True), axis=0, keepdims=True)
        s_max = jnp.max(jnp.max(s, axis=1, keepdims=True), axis=0, keepdims=True)
        heat = (s - s_min) * (1.0 / (s_max - s_min + _NORM_EPS))   # exact (1,1) div

        # --- sample map: binarised(random) | morph | hard_edge (all {0,1} -> max).
        rnd_bin = (rnd >= thr).astype(jnp.float32)
        samp = jnp.maximum(jnp.maximum(rnd_bin, morph), hard_edge)

        heat_ref[tb, 0] = heat
        samp_ref[tb, 0] = samp


def _pick_batch_block(B, per_image_bytes, target_bytes=2 * 1024 * 1024, max_tb=8):
    """Largest divisor of B whose block stays <= ~2 MiB, keeping >= 2 grid steps
    when possible (so the parallel batch axis shards across v7x's 2 TCs)."""
    best = 1
    for d in range(1, min(B, max_tb) + 1):
        if B % d:
            continue
        if B >= 2 and (B // d) < 2:
            continue
        if d * per_image_bytes <= target_bytes:
            best = d
    return best


def mixed_adaptive_random(img, droprate=0.0, *, rng_key=None):
    """img: (B, C, H, W) float.  Returns (heat_map, sample_map), each (B,1,H,W) f32."""
    B, C, H, W = img.shape
    if rng_key is None:
        rng_key = jax.random.PRNGKey(0)

    # torch.rand_like -> uniform [0, 1).  Generated outside the kernel (the
    # in-kernel TPU PRNG has no interpret/CPU lowering) and streamed in.
    rnd = jax.random.uniform(rng_key, (B, 1, H, W), dtype=jnp.float32)
    thr = jnp.asarray([droprate], dtype=jnp.float32)     # SMEM scalar

    per_image_bytes = (C * img.dtype.itemsize + 3 * 4) * H * W   # img + rnd + 2 outs
    TB = _pick_batch_block(B, per_image_bytes)
    grid = (B // TB,)

    # Shape-derived VMEM budget: double-buffered I/O blocks + halo scratch +
    # headroom for the live (H, W) f32 intermediates.
    vmem_bytes = int(2 * TB * per_image_bytes
                     + (H + 2) * (W + 2) * 4
                     + 12 * H * W * 4
                     + (2 << 20))
    vmem_bytes = max(16 << 20, min(vmem_bytes, 96 << 20))

    heat, samp = pl.pallas_call(
        _mixed_adaptive_kernel,
        out_shape=(jax.ShapeDtypeStruct((B, 1, H, W), jnp.float32),
                   jax.ShapeDtypeStruct((B, 1, H, W), jnp.float32)),
        grid=grid,
        in_specs=[
            pl.BlockSpec(memory_space=pltpu.MemorySpace.SMEM),        # threshold
            pl.BlockSpec((TB, C, H, W), lambda b: (b, 0, 0, 0)),      # images
            pl.BlockSpec((TB, 1, H, W), lambda b: (b, 0, 0, 0)),      # random map
        ],
        out_specs=(pl.BlockSpec((TB, 1, H, W), lambda b: (b, 0, 0, 0)),
                   pl.BlockSpec((TB, 1, H, W), lambda b: (b, 0, 0, 0))),
        scratch_shapes=[pltpu.VMEM((H + 2, W + 2), jnp.float32)],
        compiler_params=pltpu.CompilerParams(
            dimension_semantics=("parallel",),     # batch shards across TCs (v7x)
            vmem_limit_bytes=vmem_bytes,
        ),
    )(thr, img, rnd)
    return heat, samp


if __name__ == "__main__":
    key = jax.random.PRNGKey(0)
    k_img, k_rnd, k_rnd2 = jax.random.split(key, 3)

    # W = 128 keeps the lane dimension dense (unmasked stores); H = 16 sublane-aligned.
    B, C, H, W = 2, 4, 16, 128
    img = jax.random.normal(k_img, (B, C, H, W), dtype=jnp.float32)

    # Module buffers: droprate = 0.0, morph_kernel = ones(3, 3).
    heat_map, sample_map = mixed_adaptive_random(img, droprate=0.0, rng_key=k_rnd)
    jax.block_until_ready((heat_map, sample_map))

    assert heat_map.shape == (B, 1, H, W) and heat_map.dtype == jnp.float32
    assert sample_map.shape == (B, 1, H, W) and sample_map.dtype == jnp.float32
    # droprate = 0.0 binarises everything to 1 -> the sample map must be all ones.
    assert bool(jnp.all(sample_map == 1.0))
    assert float(jnp.min(heat_map)) >= -1e-5
    assert float(jnp.max(heat_map)) <= 1.0 + 1e-5

    # Exercise a non-trivial threshold as well (same compiled kernel: threshold in SMEM).
    heat2, samp2 = mixed_adaptive_random(img, droprate=0.5, rng_key=k_rnd2)
    jax.block_until_ready((heat2, samp2))
    assert bool(jnp.all((samp2 == 0.0) | (samp2 == 1.0)))
    assert float(jnp.min(heat2)) >= -1e-5 and float(jnp.max(heat2)) <= 1.0 + 1e-5

    print("KERNEL_OK")
</pallas_src>

<mosaic_0001>
module attributes {stable_mosaic.version = 11 : i64} {
  func.func @_mixed_adaptive_kernel(%arg0: i32, %arg1: memref<1xf32, #tpu.memory_space<smem>>, %arg2: memref<1x4x16x128xf32, #tpu.memory_space<vmem>>, %arg3: memref<1x1x16x128xf32, #tpu.memory_space<vmem>>, %arg4: memref<1x1x16x128xf32, #tpu.memory_space<vmem>>, %arg5: memref<1x1x16x128xf32, #tpu.memory_space<vmem>>, %arg6: memref<18x130xf32, #tpu.memory_space<vmem>>) attributes {dimension_semantics = [#tpu.dimension_semantics<parallel>], iteration_bounds = array<i64: 2>, scalar_prefetch = 0 : i64, scratch_operands = 1 : i64, tpu.core_type = #tpu.core_type<tc>, window_params = [{transform_indices = @transform_0, window_bounds = array<i64: 1>}, {transform_indices = @transform_1, window_bounds = array<i64: 1, 4, 16, 128>}, {transform_indices = @transform_2, window_bounds = array<i64: 1, 1, 16, 128>}, {transform_indices = @transform_3, window_bounds = array<i64: 1, 1, 16, 128>}, {transform_indices = @transform_4, window_bounds = array<i64: 1, 1, 16, 128>}]} {
    %c0 = arith.constant 0 : index
    %0 = memref.load %arg1[%c0] : memref<1xf32, #tpu.memory_space<smem>>
    %cst = arith.constant 0.000000e+00 : f32
    %1 = vector.broadcast %cst : f32 to vector<16x128xf32>
    %c0_0 = arith.constant 0 : index
    %c0_1 = arith.constant 0 : index
    %c0_2 = arith.constant 0 : index
    %c0_3 = arith.constant 0 : index
    %2 = vector.load %arg2[%c0_0, %c0_1, %c0_2, %c0_3] : memref<1x4x16x128xf32, #tpu.memory_space<vmem>>, vector<1x1x16x128xf32>
    %3 = vector.shape_cast %2 : vector<1x1x16x128xf32> to vector<16x128xf32>
    %c1 = arith.constant 1 : index
    %c1_4 = arith.constant 1 : index
    %4 = vector.load %arg6[%c1, %c1_4] : memref<18x130xf32, #tpu.memory_space<vmem>>, vector<16x128xf32>
    tpu.vector_store %arg6[%c1, %c1_4], %3 {strides = array<i32>} : memref<18x130xf32, #tpu.memory_space<vmem>>, vector<16x128xf32>,
    %5 = vector.extract_strided_slice %3 {offsets = [0, 0], sizes = [16, 1], strides = [1, 1]} : vector<16x128xf32> to vector<16x1xf32>
    %c1_5 = arith.constant 1 : index
    %c0_6 = arith.constant 0 : index
    %6 = vector.load %arg6[%c1_5, %c0_6] : memref<18x130xf32, #tpu.memory_space<vmem>>, vector<16x1xf32>
    tpu.vector_store %arg6[%c1_5, %c0_6], %5 {strides = array<i32>} : memref<18x130xf32, #tpu.memory_space<vmem>>, vector<16x1xf32>,
    %7 = vector.extract_strided_slice %3 {offsets = [0, 127], sizes = [16, 1], strides = [1, 1]} : vector<16x128xf32> to vector<16x1xf32>
    %c1_7 = arith.constant 1 : index
    %c129 = arith.constant 129 : index
    %8 = vector.load %arg6[%c1_7, %c129] : memref<18x130xf32, #tpu.memory_space<vmem>>, vector<16x1xf32>
    tpu.vector_store %arg6[%c1_7, %c129], %7 {strides = array<i32>} : memref<18x130xf32, #tpu.memory_space<vmem>>, vector<16x1xf32>,
    %c1_8 = arith.constant 1 : index
    %c0_9 = arith.constant 0 : index
    %9 = vector.load %arg6[%c1_8, %c0_9] : memref<18x130xf32, #tpu.memory_space<vmem>>, vector<1x130xf32>
    %c0_10 = arith.constant 0 : index
    %c0_11 = arith.constant 0 : index
    %10 = vector.load %arg6[%c0_10, %c0_11] : memref<18x130xf32, #tpu.memory_space<vmem>>, vector<1x130xf32>
    tpu.vector_store %arg6[%c0_10, %c0_11], %9 {strides = array<i32>} : memref<18x130xf32, #tpu.memory_space<vmem>>, vector<1x130xf32>,
    %c16 = arith.constant 16 : index
    %c0_12 = arith.constant 0 : index
    %11 = vector.load %arg6[%c16, %c0_12] : memref<18x130xf32, #tpu.memory_space<vmem>>, vector<1x130xf32>
    %c17 = arith.constant 17 : index
    %c0_13 = arith.constant 0 : index
    %12 = vector.load %arg6[%c17, %c0_13] : memref<18x130xf32, #tpu.memory_space<vmem>>, vector<1x130xf32>
    tpu.vector_store %arg6[%c17, %c0_13], %11 {strides = array<i32>} : memref<18x130xf32, #tpu.memory_space<vmem>>, vector<1x130xf32>,
    %c0_14 = arith.constant 0 : index
    %c0_15 = arith.constant 0 : index
    %13 = vector.load %arg6[%c0_14, %c0_15] : memref<18x130xf32, #tpu.memory_space<vmem>>, vector<16x128xf32>
    %c0_16 = arith.constant 0 : index
    %c1_17 = arith.constant 1 : index
    %14 = vector.load %arg6[%c0_16, %c1_17] : memref<18x130xf32, #tpu.memory_space<vmem>>, vector<16x128xf32>
    %c0_18 = arith.constant 0 : index
    %c2 = arith.constant 2 : index
    %15 = vector.load %arg6[%c0_18, %c2] : memref<18x130xf32, #tpu.memory_space<vmem>>, vector<16x128xf32>
    %c1_19 = arith.constant 1 : index
    %c0_20 = arith.constant 0 : index
    %16 = vector.load %arg6[%c1_19, %c0_20] : memref<18x130xf32, #tpu.memory_space<vmem>>, vector<16x128xf32>
    %c1_21 = arith.constant 1 : index
    %c2_22 = arith.constant 2 : index
    %17 = vector.load %arg6[%c1_21, %c2_22] : memref<18x130xf32, #tpu.memory_space<vmem>>, vector<16x128xf32>
    %c2_23 = arith.constant 2 : index
    %c0_24 = arith.constant 0 : index
    %18 = vector.load %arg6[%c2_23, %c0_24] : memref<18x130xf32, #tpu.memory_space<vmem>>, vector<16x128xf32>
    %c2_25 = arith.constant 2 : index
    %c1_26 = arith.constant 1 : index
    %19 = vector.load %arg6[%c2_25, %c1_26] : memref<18x130xf32, #tpu.memory_space<vmem>>, vector<16x128xf32>
    %c2_27 = arith.constant 2 : index
    %c2_28 = arith.constant 2 : index
    %20 = vector.load %arg6[%c2_27, %c2_28] : memref<18x130xf32, #tpu.memory_space<vmem>>, vector<16x128xf32>
    %cst_29 = arith.constant 2.000000e+00 : f32
    %21 = vector.broadcast %cst_29 : f32 to vector<16x128xf32>
    %22 = arith.mulf %21, %17 : vector<16x128xf32>
    %23 = arith.addf %15, %22 : vector<16x128xf32>
    %24 = arith.addf %23, %20 : vector<16x128xf32>
    %cst_30 = arith.constant 2.000000e+00 : f32
    %25 = vector.broadcast %cst_30 : f32 to vector<16x128xf32>
    %26 = arith.mulf %25, %16 : vector<16x128xf32>
    %27 = arith.addf %13, %26 : vector<16x128xf32>
    %28 = arith.addf %27, %18 : vector<16x128xf32>
    %29 = arith.subf %24, %28 : vector<16x128xf32>
    %cst_31 = arith.constant 1.250000e-01 : f32
    %30 = vector.broadcast %cst_31 : f32 to vector<16x128xf32>
    %31 = arith.mulf %29, %30 : vector<16x128xf32>
    %cst_32 = arith.constant 2.000000e+00 : f32
    %32 = vector.broadcast %cst_32 : f32 to vector<16x128xf32>
    %33 = arith.mulf %32, %19 : vector<16x128xf32>
    %34 = arith.addf %18, %33 : vector<16x128xf32>
    %35 = arith.addf %34, %20 : vector<16x128xf32>
    %cst_33 = arith.constant 2.000000e+00 : f32
    %36 = vector.broadcast %cst_33 : f32 to vector<16x128xf32>
    %37 = arith.mulf %36, %14 : vector<16x128xf32>
    %38 = arith.addf %13, %37 : vector<16x128xf32>
    %39 = arith.addf %38, %15 : vector<16x128xf32>
    %40 = arith.subf %35, %39 : vector<16x128xf32>
    %cst_34 = arith.constant 1.250000e-01 : f32
    %41 = vector.broadcast %cst_34 : f32 to vector<16x128xf32>
    %42 = arith.mulf %40, %41 : vector<16x128xf32>
    %43 = arith.mulf %31, %31 : vector<16x128xf32>
    %44 = arith.mulf %42, %42 : vector<16x128xf32>
    %45 = arith.addf %43, %44 : vector<16x128xf32>
    %cst_35 = arith.constant 9.99999997E-7 : f32
    %46 = vector.broadcast %cst_35 : f32 to vector<16x128xf32>
    %47 = arith.addf %45, %46 : vector<16x128xf32>
    %48 = math.sqrt %47 : vector<16x128xf32>
    %49 = arith.addf %1, %48 : vector<16x128xf32>
    %c0_36 = arith.constant 0 : index
    %c1_37 = arith.constant 1 : index
    %c0_38 = arith.constant 0 : index
    %c0_39 = arith.constant 0 : index
    %50 = vector.load %arg2[%c0_36, %c1_37, %c0_38, %c0_39] : memref<1x4x16x128xf32, #tpu.memory_space<vmem>>, vector<1x1x16x128xf32>
    %51 = vector.shape_cast %50 : vector<1x1x16x128xf32> to vector<16x128xf32>
    %c1_40 = arith.constant 1 : index
    %c1_41 = arith.constant 1 : index
    %52 = vector.load %arg6[%c1_40, %c1_41] : memref<18x130xf32, #tpu.memory_space<vmem>>, vector<16x128xf32>
    tpu.vector_store %arg6[%c1_40, %c1_41], %51 {strides = array<i32>} : memref<18x130xf32, #tpu.memory_space<vmem>>, vector<16x128xf32>,
    %53 = vector.extract_strided_slice %51 {offsets = [0, 0], sizes = [16, 1], strides = [1, 1]} : vector<16x128xf32> to vector<16x1xf32>
    %c1_42 = arith.constant 1 : index
    %c0_43 = arith.constant 0 : index
    %54 = vector.load %arg6[%c1_42, %c0_43] : memref<18x130xf32, #tpu.memory_space<vmem>>, vector<16x1xf32>
    tpu.vector_store %arg6[%c1_42, %c0_43], %53 {strides = array<i32>} : memref<18x130xf32, #tpu.memory_space<vmem>>, vector<16x1xf32>,
    %55 = vector.extract_strided_slice %51 {offsets = [0, 127], sizes = [16, 1], strides = [1, 1]} : vector<16x128xf32> to vector<16x1xf32>
    %c1_44 = arith.constant 1 : index
    %c129_45 = arith.constant 129 : index
    %56 = vector.load %arg6[%c1_44, %c129_45] : memref<18x130xf32, #tpu.memory_space<vmem>>, vector<16x1xf32>
    tpu.vector_store %arg6[%c1_44, %c129_45], %55 {strides = array<i32>} : memref<18x130xf32, #tpu.memory_space<vmem>>, vector<16x1xf32>,
    %c1_46 = arith.constant 1 : index
    %c0_47 = arith.constant 0 : index
    %57 = vector.load %arg6[%c1_46, %c0_47] : memref<18x130xf32, #tpu.memory_space<vmem>>, vector<1x130xf32>
    %c0_48 = arith.constant 0 : index
    %c0_49 = arith.constant 0 : index
    %58 = vector.load %arg6[%c0_48, %c0_49] : memref<18x130xf32, #tpu.memory_space<vmem>>, vector<1x130xf32>
    tpu.vector_store %arg6[%c0_48, %c0_49], %57 {strides = array<i32>} : memref<18x130xf32, #tpu.memory_space<vmem>>, vector<1x130xf32>,
    %c16_50 = arith.constant 16 : index
    %c0_51 = arith.constant 0 : index
    %59 = vector.load %arg6[%c16_50, %c0_51] : memref<18x130xf32, #tpu.memory_space<vmem>>, vector<1x130xf32>
    %c17_52 = arith.constant 17 : index
    %c0_53 = arith.constant 0 : index
    %60 = vector.load %arg6[%c17_52, %c0_53] : memref<18x130xf32, #tpu.memory_space<vmem>>, vector<1x130xf32>
    tpu.vector_store %arg6[%c17_52, %c0_53], %59 {strides = array<i32>} : memref<18x130xf32, #tpu.memory_space<vmem>>, vector<1x130xf32>,
    %c0_54 = arith.constant 0 : index
    %c0_55 = arith.constant 0 : index
    %61 = vector.load %arg6[%c0_54, %c0_55] : memref<18x130xf32, #tpu.memory_space<vmem>>, vector<16x128xf32>
    %c0_56 = arith.constant 0 : index
    %c1_57 = arith.constant 1 : index
    %62 = vector.load %arg6[%c0_56, %c1_57] : memref<18x130xf32, #tpu.memory_space<vmem>>, vector<16x128xf32>
    %c0_58 = arith.constant 0 : index
    %c2_59 = arith.constant 2 : index
    %63 = vector.load %arg6[%c0_58, %c2_59] : memref<18x130xf32, #tpu.memory_space<vmem>>, vector<16x128xf32>
    %c1_60 = arith.constant 1 : index
    %c0_61 = arith.constant 0 : index
    %64 = vector.load %arg6[%c1_60, %c0_61] : memref<18x130xf32, #tpu.memory_space<vmem>>, vector<16x128xf32>
    %c1_62 = arith.constant 1 : index
    %c2_63 = arith.constant 2 : index
    %65 = vector.load %arg6[%c1_62, %c2_63] : memref<18x130xf32, #tpu.memory_space<vmem>>, vector<16x128xf32>
    %c2_64 = arith.constant 2 : index
    %c0_65 = arith.constant 0 : index
    %66 = vector.load %arg6[%c2_64, %c0_65] : memref<18x130xf32, #tpu.memory_space<vmem>>, vector<16x128xf32>
    %c2_66 = arith.constant 2 : index
    %c1_67 = arith.constant 1 : index
    %67 = vector.load %arg6[%c2_66, %c1_67] : memref<18x130xf32, #tpu.memory_space<vmem>>, vector<16x128xf32>
    %c2_68 = arith.constant 2 : index
    %c2_69 = arith.constant 2 : index
    %68 = vector.load %arg6[%c2_68, %c2_69] : memref<18x130xf32, #tpu.memory_space<vmem>>, vector<16x128xf32>
    %cst_70 = arith.constant 2.000000e+00 : f32
    %69 = vector.broadcast %cst_70 : f32 to vector<16x128xf32>
    %70 = arith.mulf %69, %65 : vector<16x128xf32>
    %71 = arith.addf %63, %70 : vector<16x128xf32>
    %72 = arith.addf %71, %68 : vector<16x128xf32>
    %cst_71 = arith.constant 2.000000e+00 : f32
    %73 = vector.broadcast %cst_71 : f32 to vector<16x128xf32>
    %74 = arith.mulf %73, %64 : vector<16x128xf32>
    %75 = arith.addf %61, %74 : vector<16x128xf32>
    %76 = arith.addf %75, %66 : vector<16x128xf32>
    %77 = arith.subf %72, %76 : vector<16x128xf32>
    %cst_72 = arith.constant 1.250000e-01 : f32
    %78 = vector.broadcast %cst_72 : f32 to vector<16x128xf32>
    %79 = arith.mulf %77, %78 : vector<16x128xf32>
    %cst_73 = arith.constant 2.000000e+00 : f32
    %80 = vector.broadcast %cst_73 : f32 to vector<16x128xf32>
    %81 = arith.mulf %80, %67 : vector<16x128xf32>
    %82 = arith.addf %66, %81 : vector<16x128xf32>
    %83 = arith.addf %82, %68 : vector<16x128xf32>
    %cst_74 = arith.constant 2.000000e+00 : f32
    %84 = vector.broadcast %cst_74 : f32 to vector<16x128xf32>
    %85 = arith.mulf %84, %62 : vector<16x128xf32>
    %86 = arith.addf %61, %85 : vector<16x128xf32>
    %87 = arith.addf %86, %63 : vector<16x128xf32>
    %88 = arith.subf %83, %87 : vector<16x128xf32>
    %cst_75 = arith.constant 1.250000e-01 : f32
    %89 = vector.broadcast %cst_75 : f32 to vector<16x128xf32>
    %90 = arith.mulf %88, %89 : vector<16x128xf32>
    %91 = arith.mulf %79, %79 : vector<16x128xf32>
    %92 = arith.mulf %90, %90 : vector<16x128xf32>
    %93 = arith.addf %91, %92 : vector<16x128xf32>
    %cst_76 = arith.constant 9.99999997E-7 : f32
    %94 = vector.broadcast %cst_76 : f32 to vector<16x128xf32>
    %95 = arith.addf %93, %94 : vector<16x128xf32>
    %96 = math.sqrt %95 : vector<16x128xf32>
    %97 = arith.addf %49, %96 : vector<16x128xf32>
    %c0_77 = arith.constant 0 : index
    %c2_78 = arith.constant 2 : index
    %c0_79 = arith.constant 0 : index
    %c0_80 = arith.constant 0 : index
    %98 = vector.load %arg2[%c0_77, %c2_78, %c0_79, %c0_80] : memref<1x4x16x128xf32, #tpu.memory_space<vmem>>, vector<1x1x16x128xf32>
    %99 = vector.shape_cast %98 : vector<1x1x16x128xf32> to vector<16x128xf32>
    %c1_81 = arith.constant 1 : index
    %c1_82 = arith.constant 1 : index
    %100 = vector.load %arg6[%c1_81, %c1_82] : memref<18x130xf32, #tpu.memory_space<vmem>>, vector<16x128xf32>
    tpu.vector_store %arg6[%c1_81, %c1_82], %99 {strides = array<i32>} : memref<18x130xf32, #tpu.memory_space<vmem>>, vector<16x128xf32>,
    %101 = vector.extract_strided_slice %99 {offsets = [0, 0], sizes = [16, 1], strides = [1, 1]} : vector<16x128xf32> to vector<16x1xf32>
    %c1_83 = arith.constant 1 : index
    %c0_84 = arith.constant 0 : index
    %102 = vector.load %arg6[%c1_83, %c0_84] : memref<18x130xf32, #tpu.memory_space<vmem>>, vector<16x1xf32>
    tpu.vector_store %arg6[%c1_83, %c0_84], %101 {strides = array<i32>} : memref<18x130xf32, #tpu.memory_space<vmem>>, vector<16x1xf32>,
    %103 = vector.extract_strided_slice %99 {offsets = [0, 127], sizes = [16, 1], strides = [1, 1]} : vector<16x128xf32> to vector<16x1xf32>
    %c1_85 = arith.constant 1 : index
    %c129_86 = arith.constant 129 : index
    %104 = vector.load %arg6[%c1_85, %c129_86] : memref<18x130xf32, #tpu.memory_space<vmem>>, vector<16x1xf32>
    tpu.vector_store %arg6[%c1_85, %c129_86], %103 {strides = array<i32>} : memref<18x130xf32, #tpu.memory_space<vmem>>, vector<16x1xf32>,
    %c1_87 = arith.constant 1 : index
    %c0_88 = arith.constant 0 : index
    %105 = vector.load %arg6[%c1_87, %c0_88] : memref<18x130xf32, #tpu.memory_space<vmem>>, vector<1x130xf32>
    %c0_89 = arith.constant 0 : index
    %c0_90 = arith.constant 0 : index
    %106 = vector.load %arg6[%c0_89, %c0_90] : memref<18x130xf32, #tpu.memory_space<vmem>>, vector<1x130xf32>
    tpu.vector_store %arg6[%c0_89, %c0_90], %105 {strides = array<i32>} : memref<18x130xf32, #tpu.memory_space<vmem>>, vector<1x130xf32>,
    %c16_91 = arith.constant 16 : index
    %c0_92 = arith.constant 0 : index
    %107 = vector.load %arg6[%c16_91, %c0_92] : memref<18x130xf32, #tpu.memory_space<vmem>>, vector<1x130xf32>
    %c17_93 = arith.constant 17 : index
    %c0_94 = arith.constant 0 : index
    %108 = vector.load %arg6[%c17_93, %c0_94] : memref<18x130xf32, #tpu.memory_space<vmem>>, vector<1x130xf32>
    tpu.vector_store %arg6[%c17_93, %c0_94], %107 {strides = array<i32>} : memref<18x130xf32, #tpu.memory_space<vmem>>, vector<1x130xf32>,
    %c0_95 = arith.constant 0 : index
    %c0_96 = arith.constant 0 : index
    %109 = vector.load %arg6[%c0_95, %c0_96] : memref<18x130xf32, #tpu.memory_space<vmem>>, vector<16x128xf32>
    %c0_97 = arith.constant 0 : index
    %c1_98 = arith.constant 1 : index
    %110 = vector.load %arg6[%c0_97, %c1_98] : memref<18x130xf32, #tpu.memory_space<vmem>>, vector<16x128xf32>
    %c0_99 = arith.constant 0 : index
    %c2_100 = arith.constant 2 : index
    %111 = vector.load %arg6[%c0_99, %c2_100] : memref<18x130xf32, #tpu.memory_space<vmem>>, vector<16x128xf32>
    %c1_101 = arith.constant 1 : index
    %c0_102 = arith.constant 0 : index
    %112 = vector.load %arg6[%c1_101, %c0_102] : memref<18x130xf32, #tpu.memory_space<vmem>>, vector<16x128xf32>
    %c1_103 = arith.constant 1 : index
    %c2_104 = arith.constant 2 : index
    %113 = vector.load %arg6[%c1_103, %c2_104] : memref<18x130xf32, #tpu.memory_space<vmem>>, vector<16x128xf32>
    %c2_105 = arith.constant 2 : index
    %c0_106 = arith.constant 0 : index
    %114 = vector.load %arg6[%c2_105, %c0_106] : memref<18x130xf32, #tpu.memory_space<vmem>>, vector<16x128xf32>
    %c2_107 = arith.constant 2 : index
    %c1_108 = arith.constant 1 : index
    %115 = vector.load %arg6[%c2_107, %c1_108] : memref<18x130xf32, #tpu.memory_space<vmem>>, vector<16x128xf32>
    %c2_109 = arith.constant 2 : index
    %c2_110 = arith.constant 2 : index
    %116 = vector.load %arg6[%c2_109, %c2_110] : memref<18x130xf32, #tpu.memory_space<vmem>>, vector<16x128xf32>
    %cst_111 = arith.constant 2.000000e+00 : f32
    %117 = vector.broadcast %cst_111 : f32 to vector<16x128xf32>
    %118 = arith.mulf %117, %113 : vector<16x128xf32>
    %119 = arith.addf %111, %118 : vector<16x128xf32>
    %120 = arith.addf %119, %116 : vector<16x128xf32>
    %cst_112 = arith.constant 2.000000e+00 : f32
    %121 = vector.broadcast %cst_112 : f32 to vector<16x128xf32>
    %122 = arith.mulf %121, %112 : vector<16x128xf32>
    %123 = arith.addf %109, %122 : vector<16x128xf32>
    %124 = arith.addf %123, %114 : vector<16x128xf32>
    %125 = arith.subf %120, %124 : vector<16x128xf32>
    %cst_113 = arith.constant 1.250000e-01 : f32
    %126 = vector.broadcast %cst_113 : f32 to vector<16x128xf32>
    %127 = arith.mulf %125, %126 : vector<16x128xf32>
    %cst_114 = arith.constant 2.000000e+00 : f32
    %128 = vector.broadcast %cst_114 : f32 to vector<16x128xf32>
    %129 = arith.mulf %128, %115 : vector<16x128xf32>
    %130 = arith.addf %114, %129 : vector<16x128xf32>
    %131 = arith.addf %130, %116 : vector<16x128xf32>
    %cst_115 = arith.constant 2.000000e+00 : f32
    %132 = vector.broadcast %cst_115 : f32 to vector<16x128xf32>
    %133 = arith.mulf %132, %110 : vector<16x128xf32>
    %134 = arith.addf %109, %133 : vector<16x128xf32>
    %135 = arith.addf %134, %111 : vector<16x128xf32>
    %136 = arith.subf %131, %135 : vector<16x128xf32>
    %cst_116 = arith.constant 1.250000e-01 : f32
    %137 = vector.broadcast %cst_116 : f32 to vector<16x128xf32>
    %138 = arith.mulf %136, %137 : vector<16x128xf32>
    %139 = arith.mulf %127, %127 : vector<16x128xf32>
    %140 = arith.mulf %138, %138 : vector<16x128xf32>
    %141 = arith.addf %139, %140 : vector<16x128xf32>
    %cst_117 = arith.constant 9.99999997E-7 : f32
    %142 = vector.broadcast %cst_117 : f32 to vector<16x128xf32>
    %143 = arith.addf %141, %142 : vector<16x128xf32>
    %144 = math.sqrt %143 : vector<16x128xf32>
    %145 = arith.addf %97, %144 : vector<16x128xf32>
    %c0_118 = arith.constant 0 : index
    %c3 = arith.constant 3 : index
    %c0_119 = arith.constant 0 : index
    %c0_120 = arith.constant 0 : index
    %146 = vector.load %arg2[%c0_118, %c3, %c0_119, %c0_120] : memref<1x4x16x128xf32, #tpu.memory_space<vmem>>, vector<1x1x16x128xf32>
    %147 = vector.shape_cast %146 : vector<1x1x16x128xf32> to vector<16x128xf32>
    %c1_121 = arith.constant 1 : index
    %c1_122 = arith.constant 1 : index
    %148 = vector.load %arg6[%c1_121, %c1_122] : memref<18x130xf32, #tpu.memory_space<vmem>>, vector<16x128xf32>
    tpu.vector_store %arg6[%c1_121, %c1_122], %147 {strides = array<i32>} : memref<18x130xf32, #tpu.memory_space<vmem>>, vector<16x128xf32>,
    %149 = vector.extract_strided_slice %147 {offsets = [0, 0], sizes = [16, 1], strides = [1, 1]} : vector<16x128xf32> to vector<16x1xf32>
    %c1_123 = arith.constant 1 : index
    %c0_124 = arith.constant 0 : index
    %150 = vector.load %arg6[%c1_123, %c0_124] : memref<18x130xf32, #tpu.memory_space<vmem>>, vector<16x1xf32>
    tpu.vector_store %arg6[%c1_123, %c0_124], %149 {strides = array<i32>} : memref<18x130xf32, #tpu.memory_space<vmem>>, vector<16x1xf32>,
    %151 = vector.extract_strided_slice %147 {offsets = [0, 127], sizes = [16, 1], strides = [1, 1]} : vector<16x128xf32> to vector<16x1xf32>
    %c1_125 = arith.constant 1 : index
    %c129_126 = arith.constant 129 : index
    %152 = vector.load %arg6[%c1_125, %c129_126] : memref<18x130xf32, #tpu.memory_space<vmem>>, vector<16x1xf32>
    tpu.vector_store %arg6[%c1_125, %c129_126], %151 {strides = array<i32>} : memref<18x130xf32, #tpu.memory_space<vmem>>, vector<16x1xf32>,
    %c1_127 = arith.constant 1 : index
    %c0_128 = arith.constant 0 : index
    %153 = vector.load %arg6[%c1_127, %c0_128] : memref<18x130xf32, #tpu.memory_space<vmem>>, vector<1x130xf32>
    %c0_129 = arith.constant 0 : index
    %c0_130 = arith.constant 0 : index
    %154 = vector.load %arg6[%c0_129, %c0_130] : memref<18x130xf32, #tpu.memory_space<vmem>>, vector<1x130xf32>
    tpu.vector_store %arg6[%c0_129, %c0_130], %153 {strides = array<i32>} : memref<18x130xf32, #tpu.memory_space<vmem>>, vector<1x130xf32>,
    %c16_131 = arith.constant 16 : index
    %c0_132 = arith.constant 0 : index
    %155 = vector.load %arg6[%c16_131, %c0_132] : memref<18x130xf32, #tpu.memory_space<vmem>>, vector<1x130xf32>
    %c17_133 = arith.constant 17 : index
    %c0_134 = arith.constant 0 : index
    %156 = vector.load %arg6[%c17_133, %c0_134] : memref<18x130xf32, #tpu.memory_space<vmem>>, vector<1x130xf32>
    tpu.vector_store %arg6[%c17_133, %c0_134], %155 {strides = array<i32>} : memref<18x130xf32, #tpu.memory_space<vmem>>, vector<1x130xf32>,
    %c0_135 = arith.constant 0 : index
    %c0_136 = arith.constant 0 : index
    %157 = vector.load %arg6[%c0_135, %c0_136] : memref<18x130xf32, #tpu.memory_space<vmem>>, vector<16x128xf32>
    %c0_137 = arith.constant 0 : index
    %c1_138 = arith.constant 1 : index
    %158 = vector.load %arg6[%c0_137, %c1_138] : memref<18x130xf32, #tpu.memory_space<vmem>>, vector<16x128xf32>
    %c0_139 = arith.constant 0 : index
    %c2_140 = arith.constant 2 : index
    %159 = vector.load %arg6[%c0_139, %c2_140] : memref<18x130xf32, #tpu.memory_space<vmem>>, vector<16x128xf32>
    %c1_141 = arith.constant 1 : index
    %c0_142 = arith.constant 0 : index
    %160 = vector.load %arg6[%c1_141, %c0_142] : memref<18x130xf32, #tpu.memory_space<vmem>>, vector<16x128xf32>
    %c1_143 = arith.constant 1 : index
    %c2_144 = arith.constant 2 : index
    %161 = vector.load %arg6[%c1_143, %c2_144] : memref<18x130xf32, #tpu.memory_space<vmem>>, vector<16x128xf32>
    %c2_145 = arith.constant 2 : index
    %c0_146 = arith.constant 0 : index
    %162 = vector.load %arg6[%c2_145, %c0_146] : memref<18x130xf32, #tpu.memory_space<vmem>>, vector<16x128xf32>
    %c2_147 = arith.constant 2 : index
    %c1_148 = arith.constant 1 : index
    %163 = vector.load %arg6[%c2_147, %c1_148] : memref<18x130xf32, #tpu.memory_space<vmem>>, vector<16x128xf32>
    %c2_149 = arith.constant 2 : index
    %c2_150 = arith.constant 2 : index
    %164 = vector.load %arg6[%c2_149, %c2_150] : memref<18x130xf32, #tpu.memory_space<vmem>>, vector<16x128xf32>
    %cst_151 = arith.constant 2.000000e+00 : f32
    %165 = vector.broadcast %cst_151 : f32 to vector<16x128xf32>
    %166 = arith.mulf %165, %161 : vector<16x128xf32>
    %167 = arith.addf %159, %166 : vector<16x128xf32>
    %168 = arith.addf %167, %164 : vector<16x128xf32>
    %cst_152 = arith.constant 2.000000e+00 : f32
    %169 = vector.broadcast %cst_152 : f32 to vector<16x128xf32>
    %170 = arith.mulf %169, %160 : vector<16x128xf32>
    %171 = arith.addf %157, %170 : vector<16x128xf32>
    %172 = arith.addf %171, %162 : vector<16x128xf32>
    %173 = arith.subf %168, %172 : vector<16x128xf32>
    %cst_153 = arith.constant 1.250000e-01 : f32
    %174 = vector.broadcast %cst_153 : f32 to vector<16x128xf32>
    %175 = arith.mulf %173, %174 : vector<16x128xf32>
    %cst_154 = arith.constant 2.000000e+00 : f32
    %176 = vector.broadcast %cst_154 : f32 to vector<16x128xf32>
    %177 = arith.mulf %176, %163 : vector<16x128xf32>
    %178 = arith.addf %162, %177 : vector<16x128xf32>
    %179 = arith.addf %178, %164 : vector<16x128xf32>
    %cst_155 = arith.constant 2.000000e+00 : f32
    %180 = vector.broadcast %cst_155 : f32 to vector<16x128xf32>
    %181 = arith.mulf %180, %158 : vector<16x128xf32>
    %182 = arith.addf %157, %181 : vector<16x128xf32>
    %183 = arith.addf %182, %159 : vector<16x128xf32>
    %184 = arith.subf %179, %183 : vector<16x128xf32>
    %cst_156 = arith.constant 1.250000e-01 : f32
    %185 = vector.broadcast %cst_156 : f32 to vector<16x128xf32>
    %186 = arith.mulf %184, %185 : vector<16x128xf32>
    %187 = arith.mulf %175, %175 : vector<16x128xf32>
    %188 = arith.mulf %186, %186 : vector<16x128xf32>
    %189 = arith.addf %187, %188 : vector<16x128xf32>
    %cst_157 = arith.constant 9.99999997E-7 : f32
    %190 = vector.broadcast %cst_157 : f32 to vector<16x128xf32>
    %191 = arith.addf %189, %190 : vector<16x128xf32>
    %192 = math.sqrt %191 : vector<16x128xf32>
    %193 = arith.addf %145, %192 : vector<16x128xf32>
    %194 = vector.broadcast %0 : f32 to vector<16x128xf32>
    %195 = arith.cmpf oge, %193, %194 : vector<16x128xf32>
    %196 = arith.extui %195 : vector<16x128xi1> to vector<16x128xi32>
    %197 = arith.sitofp %196 : vector<16x128xi32> to vector<16x128xf32>
    %c1_158 = arith.constant 1 : index
    %c1_159 = arith.constant 1 : index
    %198 = vector.load %arg6[%c1_158, %c1_159] : memref<18x130xf32, #tpu.memory_space<vmem>>, vector<16x128xf32>
    tpu.vector_store %arg6[%c1_158, %c1_159], %197 {strides = array<i32>} : memref<18x130xf32, #tpu.memory_space<vmem>>, vector<16x128xf32>,
    %cst_160 = arith.constant 0.000000e+00 : f32
    %199 = vector.broadcast %cst_160 : f32 to vector<16x1xf32>
    %cst_161 = arith.constant 0.000000e+00 : f32
    %200 = vector.broadcast %cst_161 : f32 to vector<1x130xf32>
    %c1_162 = arith.constant 1 : index
    %c0_163 = arith.constant 0 : index
    %201 = vector.load %arg6[%c1_162, %c0_163] : memref<18x130xf32, #tpu.memory_space<vmem>>, vector<16x1xf32>
    tpu.vector_store %arg6[%c1_162, %c0_163], %199 {strides = array<i32>} : memref<18x130xf32, #tpu.memory_space<vmem>>, vector<16x1xf32>,
    %c1_164 = arith.constant 1 : index
    %c129_165 = arith.constant 129 : index
    %202 = vector.load %arg6[%c1_164, %c129_165] : memref<18x130xf32, #tpu.memory_space<vmem>>, vector<16x1xf32>
    tpu.vector_store %arg6[%c1_164, %c129_165], %199 {strides = array<i32>} : memref<18x130xf32, #tpu.memory_space<vmem>>, vector<16x1xf32>,
    %c0_166 = arith.constant 0 : index
    %c0_167 = arith.constant 0 : index
    %203 = vector.load %arg6[%c0_166, %c0_167] : memref<18x130xf32, #tpu.memory_space<vmem>>, vector<1x130xf32>
    tpu.vector_store %arg6[%c0_166, %c0_167], %200 {strides = array<i32>} : memref<18x130xf32, #tpu.memory_space<vmem>>, vector<1x130xf32>,
    %c17_168 = arith.constant 17 : index
    %c0_169 = arith.constant 0 : index
    %204 = vector.load %arg6[%c17_168, %c0_169] : memref<18x130xf32, #tpu.memory_space<vmem>>, vector<1x130xf32>
    tpu.vector_store %arg6[%c17_168, %c0_169], %200 {strides = array<i32>} : memref<18x130xf32, #tpu.memory_space<vmem>>, vector<1x130xf32>,
    %c0_170 = arith.constant 0 : index
    %c0_171 = arith.constant 0 : index
    %205 = vector.load %arg6[%c0_170, %c0_171] : memref<18x130xf32, #tpu.memory_space<vmem>>, vector<16x128xf32>
    %c0_172 = arith.constant 0 : index
    %c1_173 = arith.constant 1 : index
    %206 = vector.load %arg6[%c0_172, %c1_173] : memref<18x130xf32, #tpu.memory_space<vmem>>, vector<16x128xf32>
    %207 = arith.maximumf %205, %206 : vector<16x128xf32>
    %c0_174 = arith.constant 0 : index
    %c2_175 = arith.constant 2 : index
    %208 = vector.load %arg6[%c0_174, %c2_175] : memref<18x130xf32, #tpu.memory_space<vmem>>, vector<16x128xf32>
    %209 = arith.maximumf %207, %208 : vector<16x128xf32>
    %c1_176 = arith.constant 1 : index
    %c0_177 = arith.constant 0 : index
    %210 = vector.load %arg6[%c1_176, %c0_177] : memref<18x130xf32, #tpu.memory_space<vmem>>, vector<16x128xf32>
    %211 = arith.maximumf %209, %210 : vector<16x128xf32>
    %c1_178 = arith.constant 1 : index
    %c1_179 = arith.constant 1 : index
    %212 = vector.load %arg6[%c1_178, %c1_179] : memref<18x130xf32, #tpu.memory_space<vmem>>, vector<16x128xf32>
    %213 = arith.maximumf %211, %212 : vector<16x128xf32>
    %c1_180 = arith.constant 1 : index
    %c2_181 = arith.constant 2 : index
    %214 = vector.load %arg6[%c1_180, %c2_181] : memref<18x130xf32, #tpu.memory_space<vmem>>, vector<16x128xf32>
    %215 = arith.maximumf %213, %214 : vector<16x128xf32>
    %c2_182 = arith.constant 2 : index
    %c0_183 = arith.constant 0 : index
    %216 = vector.load %arg6[%c2_182, %c0_183] : memref<18x130xf32, #tpu.memory_space<vmem>>, vector<16x128xf32>
    %217 = arith.maximumf %215, %216 : vector<16x128xf32>
    %c2_184 = arith.constant 2 : index
    %c1_185 = arith.constant 1 : index
    %218 = vector.load %arg6[%c2_184, %c1_185] : memref<18x130xf32, #tpu.memory_space<vmem>>, vector<16x128xf32>
    %219 = arith.maximumf %217, %218 : vector<16x128xf32>
    %c2_186 = arith.constant 2 : index
    %c2_187 = arith.constant 2 : index
    %220 = vector.load %arg6[%c2_186, %c2_187] : memref<18x130xf32, #tpu.memory_space<vmem>>, vector<16x128xf32>
    %221 = arith.maximumf %219, %220 : vector<16x128xf32>
    %c1_188 = arith.constant 1 : index
    %c1_189 = arith.constant 1 : index
    %222 = vector.load %arg6[%c1_188, %c1_189] : memref<18x130xf32, #tpu.memory_space<vmem>>, vector<16x128xf32>
    tpu.vector_store %arg6[%c1_188, %c1_189], %221 {strides = array<i32>} : memref<18x130xf32, #tpu.memory_space<vmem>>, vector<16x128xf32>,
    %cst_190 = arith.constant 1.000000e+00 : f32
    %223 = vector.broadcast %cst_190 : f32 to vector<16x1xf32>
    %cst_191 = arith.constant 1.000000e+00 : f32
    %224 = vector.broadcast %cst_191 : f32 to vector<1x130xf32>
    %c1_192 = arith.constant 1 : index
    %c0_193 = arith.constant 0 : index
    %225 = vector.load %arg6[%c1_192, %c0_193] : memref<18x130xf32, #tpu.memory_space<vmem>>, vector<16x1xf32>
    tpu.vector_store %arg6[%c1_192, %c0_193], %223 {strides = array<i32>} : memref<18x130xf32, #tpu.memory_space<vmem>>, vector<16x1xf32>,
    %c1_194 = arith.constant 1 : index
    %c129_195 = arith.constant 129 : index
    %226 = vector.load %arg6[%c1_194, %c129_195] : memref<18x130xf32, #tpu.memory_space<vmem>>, vector<16x1xf32>
    tpu.vector_store %arg6[%c1_194, %c129_195], %223 {strides = array<i32>} : memref<18x130xf32, #tpu.memory_space<vmem>>, vector<16x1xf32>,
    %c0_196 = arith.constant 0 : index
    %c0_197 = arith.constant 0 : index
    %227 = vector.load %arg6[%c0_196, %c0_197] : memref<18x130xf32, #tpu.memory_space<vmem>>, vector<1x130xf32>
    tpu.vector_store %arg6[%c0_196, %c0_197], %224 {strides = array<i32>} : memref<18x130xf32, #tpu.memory_space<vmem>>, vector<1x130xf32>,
    %c17_198 = arith.constant 17 : index
    %c0_199 = arith.constant 0 : index
    %228 = vector.load %arg6[%c17_198, %c0_199] : memref<18x130xf32, #tpu.memory_space<vmem>>, vector<1x130xf32>
    tpu.vector_store %arg6[%c17_198, %c0_199], %224 {strides = array<i32>} : memref<18x130xf32, #tpu.memory_space<vmem>>, vector<1x130xf32>,
    %c0_200 = arith.constant 0 : index
    %c0_201 = arith.constant 0 : index
    %229 = vector.load %arg6[%c0_200, %c0_201] : memref<18x130xf32, #tpu.memory_space<vmem>>, vector<16x128xf32>
    %c0_202 = arith.constant 0 : index
    %c1_203 = arith.constant 1 : index
    %230 = vector.load %arg6[%c0_202, %c1_203] : memref<18x130xf32, #tpu.memory_space<vmem>>, vector<16x128xf32>
    %231 = arith.minimumf %229, %230 : vector<16x128xf32>
    %c0_204 = arith.constant 0 : index
    %c2_205 = arith.constant 2 : index
    %232 = vector.load %arg6[%c0_204, %c2_205] : memref<18x130xf32, #tpu.memory_space<vmem>>, vector<16x128xf32>
    %233 = arith.minimumf %231, %232 : vector<16x128xf32>
    %c1_206 = arith.constant 1 : index
    %c0_207 = arith.constant 0 : index
    %234 = vector.load %arg6[%c1_206, %c0_207] : memref<18x130xf32, #tpu.memory_space<vmem>>, vector<16x128xf32>
    %235 = arith.minimumf %233, %234 : vector<16x128xf32>
    %c1_208 = arith.constant 1 : index
    %c1_209 = arith.constant 1 : index
    %236 = vector.load %arg6[%c1_208, %c1_209] : memref<18x130xf32, #tpu.memory_space<vmem>>, vector<16x128xf32>
    %237 = arith.minimumf %235, %236 : vector<16x128xf32>
    %c1_210 = arith.constant 1 : index
    %c2_211 = arith.constant 2 : index
    %238 = vector.load %arg6[%c1_210, %c2_211] : memref<18x130xf32, #tpu.memory_space<vmem>>, vector<16x128xf32>
    %239 = arith.minimumf %237, %238 : vector<16x128xf32>
    %c2_212 = arith.constant 2 : index
    %c0_213 = arith.constant 0 : index
    %240 = vector.load %arg6[%c2_212, %c0_213] : memref<18x130xf32, #tpu.memory_space<vmem>>, vector<16x128xf32>
    %241 = arith.minimumf %239, %240 : vector<16x128xf32>
    %c2_214 = arith.constant 2 : index
    %c1_215 = arith.constant 1 : index
    %242 = vector.load %arg6[%c2_214, %c1_215] : memref<18x130xf32, #tpu.memory_space<vmem>>, vector<16x128xf32>
    %243 = arith.minimumf %241, %242 : vector<16x128xf32>
    %c2_216 = arith.constant 2 : index
    %c2_217 = arith.constant 2 : index
    %244 = vector.load %arg6[%c2_216, %c2_217] : memref<18x130xf32, #tpu.memory_space<vmem>>, vector<16x128xf32>
    %245 = arith.minimumf %243, %244 : vector<16x128xf32>
    %c0_218 = arith.constant 0 : index
    %c0_219 = arith.constant 0 : index
    %c0_220 = arith.constant 0 : index
    %c0_221 = arith.constant 0 : index
    %246 = vector.load %arg3[%c0_218, %c0_219, %c0_220, %c0_221] : memref<1x1x16x128xf32, #tpu.memory_space<vmem>>, vector<1x1x16x128xf32>
    %247 = vector.shape_cast %246 : vector<1x1x16x128xf32> to vector<16x128xf32>
    %248 = arith.addf %193, %245 : vector<16x128xf32>
    %249 = arith.addf %248, %247 : vector<16x128xf32>
    %cst_222 = arith.constant dense<0x7F800000> : vector<16xf32>
    %250 = vector.multi_reduction <minimumf>, %249, %cst_222 [1] : vector<16x128xf32> to vector<16xf32>
    %251 = vector.shape_cast %250 : vector<16xf32> to vector<16x1xf32>
    %cst_223 = arith.constant dense<0x7F800000> : vector<1xf32>
    %252 = vector.multi_reduction <minimumf>, %251, %cst_223 [0] : vector<16x1xf32> to vector<1xf32>
    %253 = vector.shape_cast %252 : vector<1xf32> to vector<1x1xf32>
    %cst_224 = arith.constant dense<0xFF800000> : vector<16xf32>
    %254 = vector.multi_reduction <maximumf>, %249, %cst_224 [1] : vector<16x128xf32> to vector<16xf32>
    %255 = vector.shape_cast %254 : vector<16xf32> to vector<16x1xf32>
    %cst_225 = arith.constant dense<0xFF800000> : vector<1xf32>
    %256 = vector.multi_reduction <maximumf>, %255, %cst_225 [0] : vector<16x1xf32> to vector<1xf32>
    %257 = vector.shape_cast %256 : vector<1xf32> to vector<1x1xf32>
    %258 = vector.broadcast %253 : vector<1x1xf32> to vector<16x128xf32>
    %259 = arith.subf %249, %258 : vector<16x128xf32>
    %260 = arith.subf %257, %253 : vector<1x1xf32>
    %cst_226 = arith.constant 9.99999997E-7 : f32
    %261 = vector.broadcast %cst_226 : f32 to vector<1x1xf32>
    %262 = arith.addf %260, %261 : vector<1x1xf32>
    %cst_227 = arith.constant 1.000000e+00 : f32
    %263 = vector.broadcast %cst_227 : f32 to vector<1x1xf32>
    %264 = arith.divf %263, %262 : vector<1x1xf32>
    %265 = vector.broadcast %264 : vector<1x1xf32> to vector<16x128xf32>
    %266 = arith.mulf %259, %265 : vector<16x128xf32>
    %267 = vector.broadcast %0 : f32 to vector<16x128xf32>
    %268 = arith.cmpf oge, %247, %267 : vector<16x128xf32>
    %269 = arith.extui %268 : vector<16x128xi1> to vector<16x128xi32>
    %270 = arith.sitofp %269 : vector<16x128xi32> to vector<16x128xf32>
    %271 = arith.maximumf %270, %245 : vector<16x128xf32>
    %272 = arith.maximumf %271, %197 : vector<16x128xf32>
    %c0_228 = arith.constant 0 : index
    %c0_229 = arith.constant 0 : index
    %c0_230 = arith.constant 0 : index
    %c0_231 = arith.constant 0 : index
    %273 = vector.load %arg4[%c0_228, %c0_229, %c0_230, %c0_231] : memref<1x1x16x128xf32, #tpu.memory_space<vmem>>, vector<1x1x16x128xf32>
    %274 = vector.shape_cast %273 : vector<1x1x16x128xf32> to vector<16x128xf32>
    %275 = vector.shape_cast %266 : vector<16x128xf32> to vector<1x1x16x128xf32>
    tpu.vector_store %arg4[%c0_228, %c0_229, %c0_230, %c0_231], %275 {strides = array<i32>} : memref<1x1x16x128xf32, #tpu.memory_space<vmem>>, vector<1x1x16x128xf32>,
    %c0_232 = arith.constant 0 : index
    %c0_233 = arith.constant 0 : index
    %c0_234 = arith.constant 0 : index
    %c0_235 = arith.constant 0 : index
    %276 = vector.load %arg5[%c0_232, %c0_233, %c0_234, %c0_235] : memref<1x1x16x128xf32, #tpu.memory_space<vmem>>, vector<1x1x16x128xf32>
    %277 = vector.shape_cast %276 : vector<1x1x16x128xf32> to vector<16x128xf32>
    %278 = vector.shape_cast %272 : vector<16x128xf32> to vector<1x1x16x128xf32>
    tpu.vector_store %arg5[%c0_232, %c0_233, %c0_234, %c0_235], %278 {strides = array<i32>} : memref<1x1x16x128xf32, #tpu.memory_space<vmem>>, vector<1x1x16x128xf32>,
    return
  }
  func.func @transform_0(%arg0: i32) -> i32 {
    %c0_i32 = arith.constant 0 : i32
    %c0_i32_0 = arith.constant 0 : i32
    return %c0_i32 : i32
  }
  func.func @transform_1(%arg0: i32) -> (i32, i32, i32, i32) {
    %c0_i32 = arith.constant 0 : i32
    %c0_i32_0 = arith.constant 0 : i32
    %c0_i32_1 = arith.constant 0 : i32
    %c0_i32_2 = arith.constant 0 : i32
    return %arg0, %c0_i32, %c0_i32_0, %c0_i32_1 : i32, i32, i32, i32
  }
  func.func @transform_2(%arg0: i32) -> (i32, i32, i32, i32) {
    %c0_i32 = arith.constant 0 : i32
    %c0_i32_0 = arith.constant 0 : i32
    %c0_i32_1 = arith.constant 0 : i32
    %c0_i32_2 = arith.constant 0 : i32
    return %arg0, %c0_i32, %c0_i32_0, %c0_i32_1 : i32, i32, i32, i32
  }
  func.func @transform_3(%arg0: i32) -> (i32, i32, i32, i32) {
    %c0_i32 = arith.constant 0 : i32
    %c0_i32_0 = arith.constant 0 : i32
    %c0_i32_1 = arith.constant 0 : i32
    %c0_i32_2 = arith.constant 0 : i32
    return %arg0, %c0_i32, %c0_i32_0, %c0_i32_1 : i32, i32, i32, i32
  }
  func.func @transform_4(%arg0: i32) -> (i32, i32, i32, i32) {
    %c0_i32 = arith.constant 0 : i32
    %c0_i32_0 = arith.constant 0 : i32
    %c0_i32_1 = arith.constant 0 : i32
    %c0_i32_2 = arith.constant 0 : i32
    return %arg0, %c0_i32, %c0_i32_0, %c0_i32_1 : i32, i32, i32, i32
  }
}

</mosaic_0001>

<bundles_post_ra>
// kernel: tpu_custom_call.1
= control target key start
LH: loop header
LB: loop body
LE: loop exit
PB: predicated region body
PF: predicated region fallthrough
CT: control target
= control target key end

     0   :  { %s3699_s0 = inlined_call_operand.<no memory space> [shape: f32[1], index: 0, kind: input, shape index: {}]   ;;  %s3700_s1 = inlined_call_operand.hbm [shape: f32[2,4,16,128], index: 1, kind: input, shape index: {}]   ;;  %s3701_s2 = inlined_call_operand.hbm [shape: f32[2,1,16,128], index: 2, kind: input, shape index: {}]   ;;  %s3702_s3 = inlined_call_operand.hbm [shape: f32[2,1,16,128], index: 3, kind: output, shape index: {0}]   ;;  %s3703_s4 = inlined_call_operand.hbm [shape: f32[2,1,16,128], index: 4, kind: output, shape index: {1}]  }
   0x1   :  { %10 = sst [smem:[#allocation3]] %s3699_s0 }
   0x2   :  { %11 = vsyncpa [#allocation5], 0 }
   0x3   :  { %13 = vsyncpa [#allocation5 + $0x1], 0 }
   0x4   :  { %14 = vsyncpa [#allocation8], 0 }
   0x5   :  { %16 = vsyncpa [#allocation8 + $0x1], 0 }
   0x6   :  { %17 = vsyncpa [#allocation6], 0 }
   0x7   :  { %19 = vsyncpa [#allocation6 + $0x1], 0 }
   0x8   :  { %20 = vsyncpa [#allocation11], 0 }
   0x9   :  { %22 = vsyncpa [#allocation11 + $0x1], 0  ;;  %s2396_s17 = smov 0   ;;  %s2398_s18 = smov 0  }
   0xa   :  { %s2400_s19 = smov 0   ;;  %s2402_s20 = smov 0  }
   0xb LB: > { %s2417_s0 = sadd.s32 4294967295, %s2352_s20   ;;  %s2027_s21 = sadd.s32 4294967294, %s2352_s20   ;;  %s2352_s20 = sphi %s2402_s20, %s3759_s20   ;;  %s2348_s19 = sphi %s2400_s19, %s3758_s19   ;;  %s2344_s18 = sphi %s2398_s18, %s3757_s18   ;;  %s2340_s17 = sphi %s2396_s17, %s3756_s17  }
   0xc   : > { %s2421_s22 = sadd.s32 1, %s2352_s20   ;;  %s56_s23 = sadd.s32 1, %s2348_s19 }
   0xd   : > { %s53_s24 = ssub.s32 %s2352_s20, %s2421_s22  ;;  %p63_p0 = scmp.ne.s32.totalorder %s2348_s19, %s2344_s18 }
   0xe   : > { %p54_p1 = scmp.eq.s32.totalorder %s53_s24, 0  ;;  %p64_p2 = scmp.eq.s32.totalorder %s2352_s20, 0 }
   0xf   : > { %p69_p3 = scmp.ne.s32.totalorder %s2344_s18, %s2340_s17  ;;  %p70_p4 = scmp.eq.s32.totalorder %s2417_s0, 0 }
  0x10   : > { %s2433_s25 = scalar_select %p54_p1, %s2348_s19, %s56_s23  }
  0x11   : > { %p2435_p5 = por %p64_p2, %p63_p0  ;;  %p2439_p6 = por %p70_p4, %p69_p3 }
  0x12   : > { %p119_p7 = scmp.eq.s32.totalorder %s2417_s0, 1  ;;  %p125_p8 = scmp.eq.s32.totalorder %s2027_s21, 1 }
  0x13   : > { %s3714_s27 = scalar_select %p2439_p6, 1, 0 }
  0x14   : > { %p2087_p10 = scmp.lt.s32.totalorder %s2352_s20, 2  ;;  %p2446_p11 = por %p119_p7, %p63_p0 }
  0x15   : > { %p2450_p12 = por %p125_p8, %p69_p3  ;;  %s2455_s30 = sand.u32 1, %s2348_s19  }
  0x16   : > { %s3715_s28 = scalar_select %p2446_p11, 1, 0 }
  0x17   : > { %s3716_s29 = scalar_select %p2450_p12, 1, 0 }
  0x18   : > { %s2061_s5 = sshll.u32 %s2352_s20, 10  ;;  %s2030_s6 = sshll.u32 %s2455_s30, 6 }
  0x19   : > { %s2462_s9 = scalar_lea.hbm %s3700_s1, %s2061_s5  ;;  %s178_s10 = scalar_lea.vmem [#allocation4], %s2030_s6 }
  0x1a   : > { %s185_s11 = sshll.u32 %s178_s10, 4  ;;  %p2466_p13 = pnand %p2087_p10, %p2435_p5  ;;  %s2470_s11 = int_to_ptr.vmem [resolvable:$true] %s185_s11 }
  0x1b   : > { %s175_s13 = scalar_lea.sflag [#allocation5], %s2455_s30  ;;  %s2190_s14 = scalar_lea.hbm %s2462_s9, 1024 }
  0x1c   : > { %p2191_p0 = scmp.ne.s32.totalorder %s2462_s9, %s2190_s14  ;;  %p2192_p1 = pneg %p2466_p13 }
  0x1d   : > { %s2195_s21 = scalar_lea.hbm %s3700_s1, 2048  ;;  %p2196_p4 = scmp.lt.u32.totalorder %s2462_s9, %s3700_s1 }
  0x1e   : > { %p2193_p2 = pnand %p2192_p1, %p2191_p0  ;;  %p2197_p5 = scmp.lt.u32.totalorder %s2195_s21, %s2190_s14 }
  0x1f   : > { %p2199_p8 = scmp.lt.u32.totalorder %s2190_s14, %s2462_s9 }
  0x20   : > { %p2194_p3 = pneg %p2193_p2  ;;  %p2198_p7 = por %p2197_p5, %p2196_p4 }
  0x22   : > { %p2200_p10 = por %p2199_p8, %p2198_p7 }
  0x24   : > { %p2201_p9 = pnand %p2200_p10, %p2194_p3 }
  0x26   : > { %2204 = shalt.err (!%p2201_p9)
}
  0x27   : > { %s2205_s26 = scalar_lea.vmem %s2470_s11, 1024  ;;  %s2354_s5 = smov [#allocation4]  }
  0x28   : > { %p2206_p0 = scmp.ne.s32.totalorder %s2470_s11, %s2205_s26  ;;  %s2210_s6 = sshll.u32 %s2354_s5, 4  ;;  %s2211_s6 = int_to_ptr.vmem [resolvable:$false] %s2210_s6 }
  0x29   : > { %s2212_s7 = scalar_lea.vmem %s2211_s6, 2048  ;;  %p2213_p11 = scmp.lt.s32.totalorder %s2470_s11, %s2211_s6 }
  0x2a   : > { %p2208_p2 = pnand %p2206_p0, %p2192_p1  ;;  %p2214_p4 = scmp.lt.s32.totalorder %s2212_s7, %s2205_s26 }
  0x2c   : > { %p2209_p12 = pneg %p2208_p2  ;;  %p2215_p5 = por %p2214_p4, %p2213_p11 }
  0x2e   : > { %p2216_p7 = pnand %p2215_p5, %p2209_p12 }
  0x30   : > { %2219 = shalt.err (!%p2216_p7)
}
  0x31   : > { %s2355_s8 = smov 128   ;;  %s2356_s10 = smov 8  }
  0x32   : > { %2076 = dma.hbm_to_vmem [thread:$0]  (!%p2466_p13), %s2462_s9, 1024, %s2470_s11, %s175_s13, %s2355_s8, %s2355_s8, %s2356_s10  }
  0x33   : > { %p2036_p9 = scmp.ge.s32.totalorder %s2352_s20, 1  ;;  %p214_p11 = scmp.lt.s32.totalorder %s2352_s20, 3 }
  0x34   : > { %s2033_s14 = sshll.u32 %s2455_s30, 4  ;;  %s2062_s16 = sshll.u32 %s2352_s20, 8 }
  0x35   : > { %p2506_p12 = pnand %p2036_p9, %p214_p11  ;;  %s199_s21 = scalar_lea.vmem [#allocation7], %s2033_s14 }
  0x36   : > { %s206_s23 = sshll.u32 %s199_s21, 4  ;;  %s2514_s5 = scalar_lea.hbm %s3701_s2, %s2062_s16  ;;  %s2516_s23 = int_to_ptr.vmem [resolvable:$true] %s206_s23 }
  0x37   : > { %s196_s9 = scalar_lea.sflag [#allocation8], %s2455_s30  ;;  %s2220_s11 = scalar_lea.hbm %s2514_s5, 256 }
  0x38   : > { %p2221_p3 = scmp.ne.s32.totalorder %s2514_s5, %s2220_s11  ;;  %s2225_s7 = scalar_lea.hbm %s3701_s2, 512 }
  0x39   : > { %p2226_p0 = scmp.lt.u32.totalorder %s2514_s5, %s3701_s2  ;;  %p2227_p2 = scmp.lt.u32.totalorder %s2225_s7, %s2220_s11 }
  0x3a   : > { %p2223_p8 = pnand %p2221_p3, %p2192_p1  ;;  %p2229_p5 = scmp.lt.u32.totalorder %s2220_s11, %s2514_s5 }
  0x3b   : > { %p2228_p4 = por %p2227_p2, %p2226_p0 }
  0x3c   : > { %p2224_p10 = pneg %p2223_p8 }
  0x3d   : > { %p2230_p7 = por %p2229_p5, %p2228_p4 }
  0x3f   : > { %p2231_p9 = pnand %p2230_p7, %p2224_p10 }
  0x41   : > { %2234 = shalt.err (!%p2231_p9)
}
  0x42   : > { %s2235_s21 = scalar_lea.vmem %s2516_s23, 256  ;;  %s2357_s24 = smov [#allocation7]  }
  0x43   : > { %p2236_p11 = scmp.ne.s32.totalorder %s2516_s23, %s2235_s21  ;;  %s2240_s26 = sshll.u32 %s2357_s24, 4  ;;  %s2241_s26 = int_to_ptr.vmem [resolvable:$false] %s2240_s26 }
  0x44   : > { %s2242_s13 = scalar_lea.vmem %s2241_s26, 512  ;;  %p2243_p6 = scmp.lt.s32.totalorder %s2516_s23, %s2241_s26 }
  0x45   : > { %p2238_p3 = pnand %p2236_p11, %p2192_p1  ;;  %p2244_p0 = scmp.lt.s32.totalorder %s2242_s13, %s2235_s21 }
  0x47   : > { %p2239_p8 = pneg %p2238_p3  ;;  %p2245_p2 = por %p2244_p0, %p2243_p6 }
  0x49   : > { %p2246_p4 = pnand %p2245_p2, %p2239_p8 }
  0x4b   : > { %2249 = shalt.err (!%p2246_p4)
}
  0x4c   : > { %2079 = dma.hbm_to_vmem [thread:$0]  (!%p2466_p13), %s2514_s5, 256, %s2516_s23, %s196_s9, %s2355_s8, %s2355_s8, %s2356_s10  }
  0x4d   : > { %218 = sbr.rel (%p2506_p12) target bundleno = 1645 (0x66d), region = 32  ;;  %s2550_s11 = sand.u32 (!%p2506_p12), 1, %s2344_s18  }
  0x4e   : > { %s2037_s6 = sshll.u32 (!%p2506_p12), %s2550_s11, 6  ;;  %s221_s7 = scalar_lea.sflag (!%p2506_p12), [#allocation5], %s2550_s11 }
  0x4f   : > { %s2554_s12 = scalar_lea.vmem (!%p2506_p12), [#allocation4], %s2037_s6  ;;  %p3719_p6 = scmp.ne.s32.totalorder (!%p2506_p12), %s3714_s27, 0 }
  0x54   : > { %2323 = dma.done.wait (%p3719_p6), %s221_s7, 1024  }
  0x55   : > { %2325 = vsyncadd (%p3719_p6), %s221_s7, 4294966272  ;;  %s2561_s30 = sshll.u32 %s2550_s11, 4  ;;  %s230_s8 = scalar_lea.sflag [#allocation8], %s2550_s11 }
  0x56   : > { %s233_s10 = scalar_lea.vmem [#allocation7], %s2561_s30 }
  0x57   : > { %2327 = dma.done.wait (%p3719_p6), %s230_s8, 256  }
  0x58   : > { %2329 = vsyncadd (%p3719_p6), %s230_s8, 4294967040  ;;  %v270_v0 = vld [vmem:[%s2554_s12 + $0x8] sm:$0xff]  ;;  %v269_v1 = vld [vmem:[%s2554_s12] sm:$0xff]  ;;  %s2358_s15 = smov 1   ;;  %s2359_s23 = smov 2   ;;  %vm273_vm0 = vcmask 1040384   ;;  %v321_v24 = vlaneseq }
  0x59   : > { %v275_v2 = vrot.slane %v270_v0, 7  ;;  %v274_v3 = vrot.slane %v269_v1, 7  ;;  %v2041_v4 = vld [vmem:[%s2554_s12 + $0x10] sm:$0xff]  ;;  %v2042_v6 = vld [vmem:[%s2554_s12 + $0x18] sm:$0xff]  ;;  %v2043_v9 = vld [vmem:[%s2554_s12 + $0x20] sm:$0xff]  ;;  %vm3708_vm1 = vcmask 1040392  }
  0x5a   : > { %v2576_v5 = vrot.slane %v2041_v4, 7  ;;  %v2583_v7 = vrot.slane %v2042_v6, 7  ;;  %v2597_v10 = vrot.slane %v2043_v9, 7  ;;  %v2044_v11 = vld [vmem:[%s2554_s12 + $0x28] sm:$0xff]  ;;  %v2045_v15 = vld [vmem:[%s2554_s12 + $0x30] sm:$0xff]  ;;  %v2046_v17 = vld [vmem:[%s2554_s12 + $0x38] sm:$0xff] }
  0x5b   : > { %281 = vrot.lane.b32.xlu1 %v275_v2, %s2358_s15  ;;  %277 = vrot.lane.b32.xlu0 %v274_v3, %s2358_s15  ;;  %v2590_v8 = vsel %vm273_vm0, %v274_v3, %v275_v2  ;;  %v2604_v12 = vrot.slane %v2044_v11, 7  ;;  %v2629_v16 = vrot.slane %v2045_v15, 7  ;;  %v2636_v18 = vrot.slane %v2046_v17, 7  ;;  %s2360_s27 = smov 126   ;;  %s2361_s5 = smov 127  }
  0x5c   : > { %v2613_v13 = vsel %vm273_vm0, %v2576_v5, %v2583_v7  ;;  %vm3711_vm2 = vcmask 0   ;;  %vm286_vm3 = vcmask 1047561   ;;  %vm288_vm4 = vcmask 7169   ;;  %s268_s9 = sld [smem:[#allocation3]]  ;;  %s267_s14 = scalar_lea.vmem [#allocation10], %s2561_s30 }
  0x5d   : > { %v2622_v14 = vsel %vm273_vm0, %v2597_v10, %v2604_v12  ;;  %v2645_v19 = vsel %vm273_vm0, %v2629_v16, %v2636_v18  ;;  %vm3707_vm5 = vcmask 8200   ;;  %vm313_vm6 = vcmask 15369   ;;  %s2063_s16 = sshll.u32 %s2417_s0, 8  ;;  %s1899_s13 = sshll.u32 %s267_s14, 4  ;;  %s3610_s13 = int_to_ptr.vmem [resolvable:$true] %s1899_s13 }
  0x5e   : > { %vm2661_vm7 = vcmp.lt.s32.totalorder %v321_v24, 130  ;;  %vm3709_vm8 = vcmask 1047560   ;;  %vm3712_vm9 = vcmask 7168   ;;  %vm3710_vm10 = vcmask 15368   ;;  %s3605_s26 = scalar_lea.hbm %s3703_s4, %s2063_s16  ;;  %s1870_s6 = scalar_lea.sflag [#allocation11], %s2550_s11 }
  0x5f   : > { %308 = vrot.lane.b32.xlu1 %v275_v2, %s2359_s23  ;;  %304 = vrot.lane.b32.xlu0 %v274_v3, %s2359_s23  ;;  %vm356_vm11 = vcmask 1046528   ;;  %vm381_vm12 = vcmask 1045504   ;;  %vm436_vm13 = vcmask 1039360   ;;  %vm3706_vm14 = vcmask 1031168   ;;  %s2250_s7 = scalar_lea.vmem %s3610_s13, 256  ;;  %p3751_p1 = scmp.ne.s32.totalorder %s3715_s28, 0 }
  0x60   : > { %vm490_vm15 = vcmask 1041408   ;;  %p2251_p13 = scmp.ne.s32.totalorder %s3610_s13, %s2250_s7  ;;  %s2364_s12 = smov [#allocation10]  }
  0x61   : > { %s2254_s8 = sshll.u32 %s2364_s12, 4  ;;  %s2255_s8 = int_to_ptr.vmem [resolvable:$false] %s2254_s8 }
  0x62   : > { %p2252_p12 = pnand %p2251_p13, %p3751_p1  ;;  %p2257_p5 = scmp.lt.s32.totalorder %s3610_s13, %s2255_s8 }
  0x63   : > { %572 = vrot.lane.b32.xlu0 %v2576_v5, %s2358_s15  ;;  %593 = vrot.lane.b32.xlu1 %v2576_v5, %s2359_s23 }
  0x64   : > { %p2253_p10 = pneg %p2252_p12 }
  0x67   : > { %576 = vrot.lane.b32.xlu0 %v2583_v7, %s2358_s15  ;;  %597 = vrot.lane.b32.xlu1 %v2583_v7, %s2359_s23 }
  0x6b   : > { %279 = vrot.lane.b32.xlu0 %v2590_v8, %s2358_s15  ;;  %306 = vrot.lane.b32.xlu1 %v2590_v8, %s2359_s23 }
  0x6f   : > { %846 = vrot.lane.b32.xlu0 %v2597_v10, %s2358_s15  ;;  %867 = vrot.lane.b32.xlu1 %v2597_v10, %s2359_s23 }
  0x73   : > { %850 = vrot.lane.b32.xlu0 %v2604_v12, %s2358_s15  ;;  %871 = vrot.lane.b32.xlu1 %v2604_v12, %s2359_s23 }
  0x77   : > { %574 = vrot.lane.b32.xlu0 %v2613_v13, %s2358_s15  ;;  %595 = vrot.lane.b32.xlu1 %v2613_v13, %s2359_s23 }
  0x7b   : > { %848 = vrot.lane.b32.xlu0 %v2622_v14, %s2358_s15  ;;  %869 = vrot.lane.b32.xlu1 %v2622_v14, %s2359_s23 }
  0x7f   : > { %1120 = vrot.lane.b32.xlu0 %v2629_v16, %s2358_s15  ;;  %1141 = vrot.lane.b32.xlu1 %v2629_v16, %s2359_s23 }
  0x83   : > { %1124 = vrot.lane.b32.xlu0 %v2636_v18, %s2358_s15  ;;  %1145 = vrot.lane.b32.xlu1 %v2636_v18, %s2359_s23 }
  0x87   : > { %1122 = vrot.lane.b32.xlu0 %v2645_v19, %s2358_s15  ;;  %1143 = vrot.lane.b32.xlu1 %v2645_v19, %s2359_s23 }
  0xcd   : > { %v282_v20 = vpop.permute.xlu1 %281  ;;  %v278_v21 = vpop.permute.xlu0 %277 }
  0xce   : > { %295 = vst.msk [vmem:[#allocation2 + $0x20] sm:$0x1] %vm3708_vm1, %v282_v20 }
  0xcf   : > { %297 = vst.msk [vmem:[#allocation2 + $0x28] sm:$0x1] %vm3711_vm2, %v282_v20  ;;  %303 = vst.msk [vmem:[#allocation2 + $0x20] sm:$0x1] %vm3711_vm2, %v275_v2 }
  0xd0   : > { %287 = vst.msk [vmem:[#allocation2] sm:$0xfe] %vm286_vm3, %v278_v21 }
  0xd1   : > { %289 = vst.msk [vmem:[#allocation2 + $0x8] sm:$0xfe] %vm288_vm4, %v278_v21  ;;  %301 = vst.msk [vmem:[#allocation2] sm:$0xfe] %vm288_vm4, %v274_v3  ;;  %v309_v22 = vpop.permute.xlu1 %308  ;;  %v305_v23 = vpop.permute.xlu0 %304 }
  0xd2   : > { %318 = vst.msk [vmem:[#allocation2 + $0x28] sm:$0x1] %vm3707_vm5, %v309_v22 }
  0xd3   : > { %314 = vst.msk [vmem:[#allocation2 + $0x8] sm:$0xfe] %vm313_vm6, %v305_v23 }
  0xd5   : > { %v573_v25 = vpop.permute.xlu0 %572  ;;  %v594_v26 = vpop.permute.xlu1 %593 }
  0xd6   : > { %v2677_v36 = vld [vmem:[#allocation2 + $0x20] sm:$0x1] }
  0xd8   : > { %v2659_v27 = vld [vmem:[#allocation2] sm:$0xfc] }
  0xd9   : > { %446 = vrot.lane.b32.xlu0 %v2659_v27, %s2360_s27  ;;  %v328_v29 = vld [vmem:[#allocation2 + $0x20] ss:$8 sm:$0x3]  ;;  %v577_v30 = vpop.permute.xlu0 %576  ;;  %v598_v31 = vpop.permute.xlu1 %597  ;;  %v2682_v37 = vld [vmem:[#allocation2] sm:$0xfe]  ;;  %v416_v51 = vmul.f32 2.0, %v2659_v27 }
  0xda   : > { %330 = vst.msk [vmem:[#allocation2 + $0x21] ss:$8 sm:$0x3] %vm2661_vm7, %v328_v29  ;;  %v320_v32 = vld [vmem:[#allocation2 + $0x1] ss:$8 sm:$0x3] }
  0xdb   : > { %325 = vst.msk [vmem:[#allocation2] ss:$8 sm:$0x3] %vm2661_vm7, %v320_v32  ;;  %v2671_v33 = vld [vmem:[#allocation2 + $0x8] sm:$0xfc] }
  0xdc   : > { %448 = vrot.lane.b32.xlu1 %v2671_v33, %s2360_s27  ;;  %v339_v38 = vld [vmem:[#allocation2 + $0x28] sm:$0x1]  ;;  %v338_v45 = vld [vmem:[#allocation2 + $0x8] sm:$0xfe]  ;;  %v417_v56 = vmul.f32 2.0, %v2671_v33 }
  0xdd   : > { %v280_v34 = vpop.permute.xlu0 %279  ;;  %v307_v35 = vpop.permute.xlu1 %306  ;;  %v349_v48 = vmul.f32 2.0, %v339_v38  ;;  %v345_v53 = vmul.f32 2.0, %v338_v45 }
  0xde   : > { %291 = vst.msk [vmem:[#allocation2 + $0x10] sm:$0xff] %vm3709_vm8, %v280_v34 }
  0xdf   : > { %293 = vst.msk [vmem:[#allocation2 + $0x18] sm:$0xff] %vm3712_vm9, %v280_v34  ;;  %302 = vst.msk [vmem:[#allocation2 + $0x10] sm:$0xff] %vm3712_vm9, %v2590_v8  ;;  %v365_v58 = vrot.slane %v349_v48, 1  ;;  %v360_v63 = vrot.slane %v345_v53, 1  ;;  %v385_v8 = vrot.slane %v2671_v33, 2 }
  0xe0   : > { %316 = vst.msk [vmem:[#allocation2 + $0x18] sm:$0xff] %vm3710_vm10, %v307_v35 }
  0xe1   : > { %v2684_v39 = vld [vmem:[#allocation2 + $0x20] sm:$0x3]  ;;  %v2686_v40 = vld [vmem:[#allocation2 + $0x28] sm:$0x3]  ;;  %v2688_v41 = vpop.permute.xlu0 %846  ;;  %v2690_v42 = vpop.permute.xlu1 %867 }
  0xe2   : > { %v2692_v43 = vld [vmem:[#allocation2] sm:$0xff]  ;;  %v2694_v44 = vld [vmem:[#allocation2 + $0x8] sm:$0xff]  ;;  %585 = vst.msk [vmem:[#allocation2 + $0x20] sm:$0x1] %vm3708_vm1, %v577_v30  ;;  %v390_v62 = vrot.slane %v2686_v40, 2 }
  0xe3   : > { %586 = vst.msk [vmem:[#allocation2 + $0x28] sm:$0x1] %vm3711_vm2, %v577_v30  ;;  %592 = vst.msk [vmem:[#allocation2 + $0x20] sm:$0x1] %vm3711_vm2, %v2583_v7 }
  0xe4   : > { %581 = vst.msk [vmem:[#allocation2] sm:$0xfe] %vm286_vm3, %v573_v25 }
  0xe5   : > { %582 = vst.msk [vmem:[#allocation2 + $0x8] sm:$0xfe] %vm288_vm4, %v573_v25  ;;  %590 = vst.msk [vmem:[#allocation2] sm:$0xfe] %vm288_vm4, %v2576_v5  ;;  %v851_v46 = vpop.permute.xlu0 %850  ;;  %v2706_v47 = vpop.permute.xlu1 %871 }
  0xe6   : > { %604 = vst.msk [vmem:[#allocation2 + $0x28] sm:$0x1] %vm3707_vm5, %v598_v31  ;;  %v2708_v50 = vld [vmem:[#allocation2 + $0x10] sm:$0xff] }
  0xe7   : > { %602 = vst.msk [vmem:[#allocation2 + $0x8] sm:$0xfe] %vm313_vm6, %v594_v26  ;;  %v335_v49 = vld [vmem:[#allocation2 + $0x18] sm:$0xff]  ;;  %450 = vrot.lane.b32.xlu0 %v2708_v50, %s2360_s27  ;;  %v2729_v2 = vmul.f32 2.0, %v2708_v50 }
  0xe8   : > { %452 = vrot.lane.b32.xlu1 %v335_v49, %s2360_s27  ;;  %v347_v52 = vmul.f32 2.0, %v335_v49  ;;  %v386_v59 = vrot.slane %v335_v49, 2 }
  0xe9   : > { %v575_v54 = vpop.permute.xlu0 %574  ;;  %v596_v55 = vpop.permute.xlu1 %595 }
  0xea   : > { %v361_v57 = vrot.slane %v347_v52, 1  ;;  %583 = vst.msk [vmem:[#allocation2 + $0x10] sm:$0xff] %vm3709_vm8, %v575_v54  ;;  %v391_v5 = vsel %vm381_vm12, %v386_v59, %v390_v62  ;;  %v2740_v15 = vld [vmem:[#allocation2 + $0x20] sm:$0x1]  ;;  %v387_v17 = vsel %vm381_vm12, %v385_v8, %v386_v59  ;;  %v419_v8 = vmul.f32 2.0, %v2686_v40 }
  0xeb   : > { %584 = vst.msk [vmem:[#allocation2 + $0x18] sm:$0xff] %vm3712_vm9, %v575_v54  ;;  %591 = vst.msk [vmem:[#allocation2 + $0x10] sm:$0xff] %vm3712_vm9, %v2613_v13  ;;  %424 = vrot.lane.b32.xlu0 %v416_v51, %s2361_s5  ;;  %v468_v51 = vmul.f32 2.0, %v2692_v43 }
  0xec   : > { %603 = vst.msk [vmem:[#allocation2 + $0x18] sm:$0xff] %vm3710_vm10, %v596_v55  ;;  %426 = vrot.lane.b32.xlu1 %v417_v56, %s2361_s5  ;;  %v366_v61 = vsel %vm356_vm11, %v361_v57, %v365_v58  ;;  %v362_v6 = vsel %vm356_vm11, %v360_v63, %v361_v57  ;;  %v2743_v20 = vld [vmem:[#allocation2] sm:$0xfe] }
  0xed   : > { %v608_v60 = vld [vmem:[#allocation2 + $0x20] ss:$8 sm:$0x3]  ;;  %v374_v1 = vadd.f32 %v366_v61, %v335_v49  ;;  %v849_v3 = vpop.permute.xlu0 %848  ;;  %v870_v4 = vpop.permute.xlu1 %869  ;;  %v372_v11 = vadd.f32 %v362_v6, %v2694_v44  ;;  %v2745_v21 = vld [vmem:[#allocation2] sm:$0xfc]  ;;  %v469_v49 = vmul.f32 2.0, %v2694_v44 }
  0xee   : > { %609 = vst.msk [vmem:[#allocation2 + $0x21] ss:$8 sm:$0x3] %vm2661_vm7, %v608_v60  ;;  %v605_v0 = vld [vmem:[#allocation2 + $0x1] ss:$8 sm:$0x3] }
  0xef   : > { %606 = vst.msk [vmem:[#allocation2] ss:$8 sm:$0x3] %vm2661_vm7, %v605_v0  ;;  %v2733_v7 = vadd.f32 %v391_v5, %v374_v1  ;;  %v618_v9 = vld [vmem:[#allocation2 + $0x28] sm:$0x1]  ;;  %428 = vrot.lane.b32.xlu0 %v2729_v2, %s2361_s5  ;;  %v2751_v24 = vadd.f32 %v387_v17, %v372_v11 }
  0xf0   : > { %430 = vrot.lane.b32.xlu1 %v347_v52, %s2361_s5  ;;  %v617_v13 = vld [vmem:[#allocation2 + $0x8] sm:$0xfe]  ;;  %v628_v30 = vmul.f32 2.0, %v618_v9 }
  0xf1   : > { %v2747_v22 = vpop.permute.xlu0 %1120  ;;  %v2749_v23 = vpop.permute.xlu1 %1141  ;;  %v624_v32 = vmul.f32 2.0, %v617_v13  ;;  %v2779_v38 = vld [vmem:[#allocation2 + $0x8] sm:$0xfc] }
  0xf2   : > { %v2757_v29 = vld [vmem:[#allocation2 + $0x10] sm:$0xff]  ;;  %v662_v53 = vrot.slane %v2779_v38, 2 }
  0xf3   : > { %v614_v31 = vld [vmem:[#allocation2 + $0x18] sm:$0xff]  ;;  %857 = vst.msk [vmem:[#allocation2 + $0x10] sm:$0xff] %vm3709_vm8, %v849_v3  ;;  %481 = vrot.lane.b32.xlu0 %v2692_v43, %s2360_s27 }
  0xf4   : > { %483 = vrot.lane.b32.xlu1 %v2694_v44, %s2360_s27  ;;  %858 = vst.msk [vmem:[#allocation2 + $0x18] sm:$0xff] %vm3712_vm9, %v849_v3  ;;  %865 = vst.msk [vmem:[#allocation2 + $0x10] sm:$0xff] %vm3712_vm9, %v2622_v14  ;;  %v2777_v35 = vmul.f32 2.0, %v614_v31  ;;  %v643_v14 = vrot.slane %v628_v30, 1 }
  0xf5   : > { %v2753_v25 = vld [vmem:[#allocation2 + $0x28] sm:$0x3]  ;;  %v2755_v26 = vld [vmem:[#allocation2 + $0x20] sm:$0x3]  ;;  %877 = vst.msk [vmem:[#allocation2 + $0x18] sm:$0xff] %vm3710_vm10, %v870_v4  ;;  %v1146_v45 = vpop.permute.xlu1 %1145 }
  0xf6   : > { %859 = vst.msk [vmem:[#allocation2 + $0x20] sm:$0x1] %vm3708_vm1, %v851_v46  ;;  %v2766_v33 = vld [vmem:[#allocation2 + $0x8] sm:$0xff]  ;;  %v2768_v34 = vld [vmem:[#allocation2] sm:$0xff]  ;;  %v667_v48 = vrot.slane %v2753_v25, 2 }
  0xf7   : > { %860 = vst.msk [vmem:[#allocation2 + $0x28] sm:$0x1] %vm3711_vm2, %v851_v46  ;;  %866 = vst.msk [vmem:[#allocation2 + $0x20] sm:$0x1] %vm3711_vm2, %v2604_v12  ;;  %v1125_v12 = vpop.permute.xlu0 %1124  ;;  %v639_v46 = vrot.slane %v2777_v35, 1  ;;  %454 = vrot.lane.b32.xlu0 %v2684_v39, %s2360_s27 }
  0xf8   : > { %878 = vst.msk [vmem:[#allocation2 + $0x28] sm:$0x1] %vm3707_vm5, %v2706_v47  ;;  %v663_v47 = vrot.slane %v614_v31, 2  ;;  %456 = vrot.lane.b32.xlu1 %v2686_v40, %s2360_s27 }
  0xf9   : > { %855 = vst.msk [vmem:[#allocation2] sm:$0xfe] %vm286_vm3, %v2688_v41  ;;  %v1144_v58 = vpop.permute.xlu1 %1143 }
  0xfa   : > { %856 = vst.msk [vmem:[#allocation2 + $0x8] sm:$0xfe] %vm288_vm4, %v2688_v41  ;;  %864 = vst.msk [vmem:[#allocation2] sm:$0xfe] %vm288_vm4, %v2597_v10  ;;  %v638_v41 = vrot.slane %v624_v32, 1  ;;  %v644_v10 = vsel %vm356_vm11, %v639_v46, %v643_v14  ;;  %v668_v55 = vsel %vm381_vm12, %v663_v47, %v667_v48  ;;  %v664_v60 = vsel %vm381_vm12, %v662_v53, %v663_v47 }
  0xfb   : > { %876 = vst.msk [vmem:[#allocation2 + $0x8] sm:$0xfe] %vm313_vm6, %v2690_v42  ;;  %v652_v52 = vadd.f32 %v644_v10, %v614_v31  ;;  %v1123_v54 = vpop.permute.xlu0 %1122  ;;  %472 = vrot.lane.b32.xlu0 %v468_v51, %s2361_s5  ;;  %v2805_v44 = vld [vmem:[#allocation2 + $0x10] sm:$0xff]  ;;  %v2841_v47 = vmul.f32 2.0, %v2757_v29 }
  0xfc   : > { %v640_v42 = vsel %vm356_vm11, %v638_v41, %v639_v46  ;;  %474 = vrot.lane.b32.xlu1 %v469_v49, %s2361_s5  ;;  %v888_v62 = vld [vmem:[#allocation2 + $0x18] sm:$0xff]  ;;  %1131 = vst.msk [vmem:[#allocation2 + $0x10] sm:$0xff] %vm3709_vm8, %v1123_v54 }
  0xfd   : > { %v650_v56 = vadd.f32 %v640_v42, %v2766_v33  ;;  %v2807_v59 = vadd.f32 %v668_v55, %v652_v52  ;;  %1132 = vst.msk [vmem:[#allocation2 + $0x18] sm:$0xff] %vm3712_vm9, %v1123_v54  ;;  %1139 = vst.msk [vmem:[#allocation2 + $0x10] sm:$0xff] %vm3712_vm9, %v2645_v19  ;;  %v900_v0 = vmul.f32 2.0, %v888_v62  ;;  %v418_v19 = vmul.f32 2.0, %v2684_v39 }
  0xfe   : > { %1151 = vst.msk [vmem:[#allocation2 + $0x18] sm:$0xff] %vm3710_vm10, %v1144_v58  ;;  %v2826_v11 = vld [vmem:[#allocation2 + $0x20] sm:$0x1]  ;;  %v937_v40 = vrot.slane %v888_v62, 2  ;;  %v2888_v54 = vmul.f32 2.0, %v2805_v44  ;;  %v743_v55 = vmul.f32 2.0, %v2768_v34 }
  0xff   : > { %v882_v57 = vld [vmem:[#allocation2 + $0x20] ss:$8 sm:$0x3]  ;;  %v2813_v63 = vadd.f32 %v664_v60, %v650_v56  ;;  %726 = vrot.lane.b32.xlu0 %v2757_v29, %s2360_s27  ;;  %v913_v5 = vrot.slane %v900_v0, 1  ;;  %v696_v56 = vmul.f32 2.0, %v2753_v25 }
 0x100   : > { %883 = vst.msk [vmem:[#allocation2 + $0x21] ss:$8 sm:$0x3] %vm2661_vm7, %v882_v57  ;;  %v892_v61 = vld [vmem:[#allocation2 + $0x28] sm:$0x1]  ;;  %728 = vrot.lane.b32.xlu1 %v614_v31, %s2360_s27  ;;  %v695_v57 = vmul.f32 2.0, %v2755_v26 }
 0x101   : > { %v902_v1 = vmul.f32 2.0, %v892_v61  ;;  %v2845_v48 = vld [vmem:[#allocation2] sm:$0xfe] }
 0x102   : > { %v891_v3 = vld [vmem:[#allocation2 + $0x8] sm:$0xfe]  ;;  %v2849_v49 = vld [vmem:[#allocation2] sm:$0xfc] }
 0x103   : > { %v879_v4 = vld [vmem:[#allocation2 + $0x1] ss:$8 sm:$0x3]  ;;  %v917_v6 = vrot.slane %v902_v1, 1  ;;  %v898_v9 = vmul.f32 2.0, %v891_v3  ;;  %432 = vrot.lane.b32.xlu0 %v418_v19, %s2361_s5  ;;  %v967_v61 = vmul.f32 2.0, %v2849_v49 }
 0x104   : > { %880 = vst.msk [vmem:[#allocation2] ss:$8 sm:$0x3] %vm2661_vm7, %v879_v4  ;;  %v2828_v13 = vld [vmem:[#allocation2 + $0x8] sm:$0xfc]  ;;  %434 = vrot.lane.b32.xlu1 %v419_v8, %s2361_s5  ;;  %v2911_v60 = vld [vmem:[#allocation2 + $0x10] sm:$0xff] }
 0x105   : > { %v918_v17 = vsel %vm356_vm11, %v913_v5, %v917_v6  ;;  %v912_v46 = vrot.slane %v898_v9, 1  ;;  %v936_v41 = vrot.slane %v2828_v13, 2  ;;  %v2909_v58 = vld [vmem:[#allocation2 + $0x18] sm:$0xff]  ;;  %v348_v9 = vmul.f32 2.0, %v2677_v36 }
 0x106   : > { %v926_v32 = vadd.f32 %v918_v17, %v888_v62  ;;  %v623_v36 = vmul.f32 2.0, %v2743_v20 }
 0x107   : > { %v2833_v30 = vld [vmem:[#allocation2 + $0x20] sm:$0x3]  ;;  %v2835_v31 = vld [vmem:[#allocation2 + $0x28] sm:$0x3]  ;;  %705 = vrot.lane.b32.xlu0 %v2841_v47, %s2361_s5  ;;  %v938_v52 = vsel %vm381_vm12, %v936_v41, %v937_v40 }
 0x108   : > { %1133 = vst.msk [vmem:[#allocation2 + $0x20] sm:$0x1] %vm3708_vm1, %v1125_v12  ;;  %v941_v14 = vrot.slane %v2835_v31, 2  ;;  %707 = vrot.lane.b32.xlu1 %v2777_v35, %s2361_s5  ;;  %v970_v3 = vmul.f32 2.0, %v2835_v31  ;;  %v969_v4 = vmul.f32 2.0, %v2833_v30 }
 0x109   : > { %1134 = vst.msk [vmem:[#allocation2 + $0x28] sm:$0x1] %vm3711_vm2, %v1125_v12  ;;  %1140 = vst.msk [vmem:[#allocation2 + $0x20] sm:$0x1] %vm3711_vm2, %v2636_v18  ;;  %v914_v18 = vsel %vm356_vm11, %v912_v46, %v913_v5  ;;  %v358_v46 = vrot.slane %v2729_v2, 1  ;;  %v383_v2 = vrot.slane %v2708_v50, 2 }
 0x10a   : > { %1152 = vst.msk [vmem:[#allocation2 + $0x28] sm:$0x1] %vm3707_vm5, %v1146_v45  ;;  %v942_v12 = vsel %vm381_vm12, %v937_v40, %v941_v14  ;;  %v627_v14 = vmul.f32 2.0, %v2740_v15  ;;  %v382_v15 = vrot.slane %v2659_v27, 2 }
 0x10b   : > { %v887_v10 = vld [vmem:[#allocation2 + $0x8] sm:$0xff]  ;;  %v2851_v51 = vld [vmem:[#allocation2] sm:$0xff]  ;;  %v2867_v45 = vadd.f32 %v942_v12, %v926_v32  ;;  %722 = vrot.lane.b32.xlu0 %v2745_v21, %s2360_s27  ;;  %v363_v32 = vrot.slane %v348_v9, 1 }
 0x10c   : > { %1130 = vst.msk [vmem:[#allocation2 + $0x8] sm:$0xfe] %vm288_vm4, %v2747_v22  ;;  %v924_v35 = vadd.f32 %v914_v18, %v887_v10  ;;  %724 = vrot.lane.b32.xlu1 %v2779_v38, %s2360_s27  ;;  %v1017_v1 = vmul.f32 2.0, %v2851_v51 }
 0x10d   : > { %1129 = vst.msk [vmem:[#allocation2] sm:$0xfe] %vm286_vm3, %v2747_v22  ;;  %v693_v22 = vmul.f32 2.0, %v2745_v21  ;;  %v364_v20 = vsel %vm356_vm11, %v358_v46, %v363_v32 }
 0x10e   : > { %1150 = vst.msk [vmem:[#allocation2 + $0x8] sm:$0xfe] %vm313_vm6, %v2749_v23  ;;  %v2870_v42 = vadd.f32 %v938_v52, %v924_v35  ;;  %v694_v23 = vmul.f32 2.0, %v2779_v38  ;;  %v744_v38 = vmul.f32 2.0, %v2766_v33 }
 0x10f   : > { %1138 = vst.msk [vmem:[#allocation2] sm:$0xfe] %vm288_vm4, %v2629_v16  ;;  %701 = vrot.lane.b32.xlu0 %v693_v22, %s2361_s5  ;;  %v641_v22 = vrot.slane %v627_v14, 1 }
 0x110   : > { %703 = vrot.lane.b32.xlu1 %v694_v23, %s2361_s5  ;;  %v636_v23 = vrot.slane %v2841_v47, 1  ;;  %v373_v47 = vadd.f32 %v364_v20, %v2708_v50 }
 0x111   : > { %v1156_v53 = vld [vmem:[#allocation2 + $0x20] ss:$8 sm:$0x3] }
 0x112   : > { %1157 = vst.msk [vmem:[#allocation2 + $0x21] ss:$8 sm:$0x3] %vm2661_vm7, %v1156_v53  ;;  %v635_v53 = vrot.slane %v623_v36, 1 }
 0x113   : > { %1000 = vrot.lane.b32.xlu0 %v2805_v44, %s2360_s27 }
 0x114   : > { %1002 = vrot.lane.b32.xlu1 %v888_v62, %s2360_s27  ;;  %v968_v62 = vmul.f32 2.0, %v2828_v13  ;;  %v637_v32 = vsel %vm356_vm11, %v635_v53, %v636_v23 }
 0x115   : > { %v2949_v5 = vld [vmem:[#allocation2 + $0x8] sm:$0xfc]  ;;  %v649_v20 = vadd.f32 %v637_v32, %v2768_v34 }
 0x116   : > { %v1153_v16 = vld [vmem:[#allocation2 + $0x1] ss:$8 sm:$0x3]  ;;  %v2951_v6 = vld [vmem:[#allocation2] sm:$0xfc]  ;;  %v1242_v19 = vmul.f32 2.0, %v2949_v5 }
 0x117   : > { %1154 = vst.msk [vmem:[#allocation2] ss:$8 sm:$0x3] %vm2661_vm7, %v1153_v16  ;;  %979 = vrot.lane.b32.xlu0 %v2888_v54, %s2361_s5  ;;  %v1241_v8 = vmul.f32 2.0, %v2951_v6 }
 0x118   : > { %981 = vrot.lane.b32.xlu1 %v900_v0, %s2361_s5  ;;  %v1018_v0 = vmul.f32 2.0, %v887_v10 }
 0x119   : > { %v2980_v18 = vld [vmem:[#allocation2 + $0x28] sm:$0x3]  ;;  %v2982_v35 = vld [vmem:[#allocation2 + $0x20] sm:$0x3] }
 0x11b   : > { %756 = vrot.lane.b32.xlu0 %v2768_v34, %s2360_s27 }
 0x11c   : > { %758 = vrot.lane.b32.xlu1 %v2766_v33, %s2360_s27  ;;  %v2918_v33 = vmul.f32 2.0, %v2909_v58 }
 0x11e   : > { %v2963_v17 = vld [vmem:[#allocation2 + $0x8] sm:$0xff] }
 0x11f   : > { %730 = vrot.lane.b32.xlu0 %v2755_v26, %s2360_s27 }
 0x120   : > { %732 = vrot.lane.b32.xlu1 %v2753_v25, %s2360_s27  ;;  %v2921_v25 = vmul.f32 2.0, %v2911_v60 }
 0x123   : > { %747 = vrot.lane.b32.xlu0 %v743_v55, %s2361_s5  ;;  %v1244_v55 = vmul.f32 2.0, %v2980_v18 }
 0x124   : > { %749 = vrot.lane.b32.xlu1 %v744_v38, %s2361_s5 }
 0x127   : > { %709 = vrot.lane.b32.xlu0 %v695_v57, %s2361_s5  ;;  %v901_v57 = vmul.f32 2.0, %v2826_v11  ;;  %v659_v11 = vrot.slane %v2745_v21, 2 }
 0x128   : > { %711 = vrot.lane.b32.xlu1 %v696_v56, %s2361_s5  ;;  %v1243_v56 = vmul.f32 2.0, %v2982_v35 }
 0x12b   : > { %1274 = vrot.lane.b32.xlu0 %v2911_v60, %s2360_s27 }
 0x12c   : > { %1276 = vrot.lane.b32.xlu1 %v2909_v58, %s2360_s27 }
 0x12f   : > { %1253 = vrot.lane.b32.xlu0 %v2921_v25, %s2361_s5 }
 0x130   : > { %1255 = vrot.lane.b32.xlu1 %v2918_v33, %s2361_s5 }
 0x133   : > { %996 = vrot.lane.b32.xlu0 %v2849_v49, %s2360_s27 }
 0x134   : > { %998 = vrot.lane.b32.xlu1 %v2828_v13, %s2360_s27  ;;  %v344_v13 = vmul.f32 2.0, %v2682_v37 }
 0x136   : > { %v357_v40 = vrot.slane %v344_v13, 1  ;;  %v642_v13 = vsel %vm356_vm11, %v636_v23, %v641_v22 }
 0x137   : > { %975 = vrot.lane.b32.xlu0 %v967_v61, %s2361_s5  ;;  %v388_v61 = vrot.slane %v2684_v39, 2 }
 0x138   : > { %977 = vrot.lane.b32.xlu1 %v968_v62, %s2361_s5  ;;  %v359_v52 = vsel %vm356_vm11, %v357_v40, %v358_v46  ;;  %v897_v62 = vmul.f32 2.0, %v2845_v48  ;;  %v915_v46 = vrot.slane %v901_v57, 1  ;;  %v660_v40 = vrot.slane %v2757_v29, 2 }
 0x139   : > { %v933_v57 = vrot.slane %v2849_v49, 2 }
 0x13a   : > { %v909_v14 = vrot.slane %v897_v62, 1 }
 0x13b   : > { %1030 = vrot.lane.b32.xlu0 %v2851_v51, %s2360_s27 }
 0x13c   : > { %1032 = vrot.lane.b32.xlu1 %v887_v10, %s2360_s27  ;;  %v1292_v10 = vmul.f32 2.0, %v2963_v17 }
 0x13f   : > { %1004 = vrot.lane.b32.xlu0 %v2833_v30, %s2360_s27 }
 0x140   : > { %1006 = vrot.lane.b32.xlu1 %v2835_v31, %s2360_s27  ;;  %v2965_v31 = vld [vmem:[#allocation2] sm:$0xff] }
 0x141   : > { %v1291_v12 = vmul.f32 2.0, %v2965_v31 }
 0x143   : > { %1021 = vrot.lane.b32.xlu0 %v1017_v1, %s2361_s5  ;;  %v1163_v1 = vld [vmem:[#allocation2] sm:$0xfe] }
 0x144   : > { %1023 = vrot.lane.b32.xlu1 %v1018_v0, %s2361_s5  ;;  %v1164_v0 = vld [vmem:[#allocation2 + $0x20] sm:$0x1] }
 0x145   : > { %v1175_v36 = vmul.f32 2.0, %v1164_v0 }
 0x147   : > { %983 = vrot.lane.b32.xlu0 %v969_v4, %s2361_s5  ;;  %v371_v4 = vadd.f32 %v359_v52, %v2692_v43  ;;  %v661_v52 = vsel %vm381_vm12, %v659_v11, %v660_v40 }
 0x148   : > { %985 = vrot.lane.b32.xlu1 %v970_v3, %s2361_s5  ;;  %v389_v3 = vsel %vm381_vm12, %v383_v2, %v388_v61  ;;  %v1184_v61 = vrot.slane %v2921_v25, 1 }
 0x14b   : > { %1270 = vrot.lane.b32.xlu0 %v2951_v6, %s2360_s27  ;;  %v2976_v37 = vpop.permute.xlu0 %446 }
 0x14c   : > { %1272 = vrot.lane.b32.xlu1 %v2949_v5, %s2360_s27 }
 0x14e   : > { %v2974_v41 = vpop.permute.xlu1 %448 }
 0x14f   : > { %1249 = vrot.lane.b32.xlu0 %v1241_v8, %s2361_s5  ;;  %v384_v8 = vsel %vm381_vm12, %v382_v15, %v383_v2  ;;  %v651_v15 = vadd.f32 %v642_v13, %v2757_v29 }
 0x150   : > { %1251 = vrot.lane.b32.xlu1 %v1242_v19, %s2361_s5  ;;  %v910_v19 = vrot.slane %v2888_v54, 1  ;;  %v665_v54 = vrot.slane %v2755_v26, 2  ;;  %v3018_v2 = vadd.f32 %v384_v8, %v371_v4  ;;  %v3036_v4 = vadd.f32 %v661_v52, %v649_v20 }
 0x152   : > { %v916_v23 = vsel %vm356_vm11, %v910_v19, %v915_v46  ;;  %v911_v62 = vsel %vm356_vm11, %v909_v14, %v910_v19  ;;  %v1208_v46 = vrot.slane %v2911_v60, 2 }
 0x153   : > { %1304 = vrot.lane.b32.xlu0 %v2965_v31, %s2360_s27  ;;  %v925_v8 = vadd.f32 %v916_v23, %v2805_v44  ;;  %v923_v13 = vadd.f32 %v911_v62, %v2851_v51 }
 0x154   : > { %1306 = vrot.lane.b32.xlu1 %v2963_v17, %s2360_s27 }
 0x157   : > { %1295 = vrot.lane.b32.xlu0 %v1291_v12, %s2361_s5  ;;  %v3015_v12 = vadd.f32 %v389_v3, %v373_v47  ;;  %v1189_v47 = vrot.slane %v1175_v36, 1 }
 0x158   : > { %1297 = vrot.lane.b32.xlu1 %v1292_v10, %s2361_s5  ;;  %v1171_v10 = vmul.f32 2.0, %v1163_v1  ;;  %v666_v1 = vsel %vm381_vm12, %v660_v40, %v665_v54  ;;  %v1213_v40 = vrot.slane %v2982_v35, 2 }
 0x159   : > { %v2993_v38 = vpop.permute.xlu0 %450  ;;  %v3034_v3 = vadd.f32 %v666_v1, %v651_v15  ;;  %v1190_v14 = vsel %vm356_vm11, %v1184_v61, %v1189_v47 }
 0x15a   : > { %v2991_v16 = vpop.permute.xlu1 %452  ;;  %v1183_v0 = vrot.slane %v1171_v10, 1  ;;  %v1207_v10 = vrot.slane %v2951_v6, 2 }
 0x15b   : > { %1257 = vrot.lane.b32.xlu0 %v1243_v56, %s2361_s5  ;;  %v939_v56 = vrot.slane %v2833_v30, 2 }
 0x15c   : > { %1259 = vrot.lane.b32.xlu1 %v1244_v55, %s2361_s5  ;;  %v934_v55 = vrot.slane %v2805_v44, 2  ;;  %v1185_v36 = vsel %vm356_vm11, %v1183_v0, %v1184_v61  ;;  %v1209_v61 = vsel %vm381_vm12, %v1207_v10, %v1208_v46 }
 0x15d   : > { %v425_v48 = vpop.permute.xlu0 %424 }
 0x15e   : > { %v427_v9 = vpop.permute.xlu1 %426  ;;  %v940_v19 = vsel %vm381_vm12, %v934_v55, %v939_v56  ;;  %v935_v32 = vsel %vm381_vm12, %v933_v57, %v934_v55  ;;  %v1199_v55 = vadd.f32 %v1190_v14, %v2911_v60  ;;  %v1197_v56 = vadd.f32 %v1185_v36, %v2965_v31 }
 0x15f   : > { %1278 = vrot.lane.b32.xlu0 %v2982_v35, %s2360_s27  ;;  %v3052_v52 = vadd.f32 %v940_v19, %v925_v8  ;;  %v3054_v23 = vadd.f32 %v935_v32, %v923_v13  ;;  %v1214_v57 = vsel %vm381_vm12, %v1208_v46, %v1213_v40  ;;  %v460_v8 = vsel %vm3706_vm14, %v2993_v38, %v2991_v16 }
 0x160   : > { %1280 = vrot.lane.b32.xlu1 %v2980_v18, %s2360_s27  ;;  %v3066_v0 = vadd.f32 %v1214_v57, %v1199_v55  ;;  %v3068_v1 = vadd.f32 %v1209_v61, %v1197_v56  ;;  %v459_v16 = vsel %vm3706_vm14, %v2976_v37, %v2974_v41 }
 0x161   : > { %v429_v53 = vpop.permute.xlu0 %428 }
 0x162   : > { %v431_v22 = vpop.permute.xlu1 %430 }
 0x163   : > { %402 = vrot.lane.b32.xlu0 %v3018_v2, %s2359_s23  ;;  %v438_v54 = vsel %vm436_vm13, %v429_v53, %v431_v22  ;;  %v437_v22 = vsel %vm436_vm13, %v425_v48, %v427_v9 }
 0x164   : > { %404 = vrot.lane.b32.xlu1 %v3015_v12, %s2359_s23  ;;  %v444_v62 = vadd.f32 %v438_v54, %v2708_v50  ;;  %v443_v19 = vadd.f32 %v437_v22, %v2659_v27 }
 0x165   : > { %v482_v25 = vpop.permute.xlu0 %481 }
 0x166   : > { %v484_v11 = vpop.permute.xlu1 %483  ;;  %v466_v13 = vadd.f32 %v460_v8, %v444_v62  ;;  %v465_v27 = vadd.f32 %v459_v16, %v443_v19 }
 0x167   : > { %679 = vrot.lane.b32.xlu0 %v3036_v4, %s2359_s23  ;;  %v485_v9 = vsel %vm3706_vm14, %v482_v25, %v484_v11 }
 0x168   : > { %681 = vrot.lane.b32.xlu1 %v3034_v3, %s2359_s23  ;;  %v492_v38 = vrot.slane %v466_v13, 6 }
 0x169   : > { %v455_v20 = vpop.permute.xlu0 %454 }
 0x16a   : > { %v457_v15 = vpop.permute.xlu1 %456 }
 0x16b   : > { %953 = vrot.lane.b32.xlu0 %v3054_v23, %s2359_s23  ;;  %v461_v57 = vsel %vm3706_vm14, %v455_v20, %v457_v15 }
 0x16c   : > { %955 = vrot.lane.b32.xlu1 %v3052_v52, %s2359_s23 }
 0x16d   : > { %v473_v47 = vpop.permute.xlu0 %472 }
 0x16e   : > { %v475_v53 = vpop.permute.xlu1 %474 }
 0x16f   : > { %v476_v50 = vsel %vm436_vm13, %v473_v47, %v475_v53  ;;  %1227 = vrot.lane.b32.xlu0 %v3068_v1, %s2359_s23 }
 0x170   : > { %v478_v32 = vadd.f32 %v476_v50, %v2692_v43  ;;  %1229 = vrot.lane.b32.xlu1 %v3066_v0, %s2359_s23 }
 0x171   : > { %v727_v14 = vpop.permute.xlu0 %726 }
 0x172   : > { %v487_v48 = vadd.f32 %v485_v9, %v478_v32  ;;  %v729_v46 = vpop.permute.xlu1 %728 }
 0x174   : > { %v491_v40 = vrot.slane %v487_v48, 6 }
 0x175   : > { %v433_v10 = vpop.permute.xlu0 %432 }
 0x176   : > { %v497_v43 = vsub.f32 %v465_v27, %v491_v40  ;;  %v435_v36 = vpop.permute.xlu1 %434  ;;  %v493_v54 = vsel %vm490_vm15, %v491_v40, %v492_v38 }
 0x177   : > { %v439_v55 = vsel %vm436_vm13, %v433_v10, %v435_v36  ;;  %v498_v56 = vsub.f32 %v466_v13, %v493_v54 }
 0x178   : > { %v445_v11 = vadd.f32 %v439_v55, %v2684_v39  ;;  %v500_v25 = vmul.f32 0.125, %v497_v43 }
 0x179   : > { %v501_v61 = vmul.f32 0.125, %v498_v56  ;;  %v706_v37 = vpop.permute.xlu0 %705 }
 0x17a   : > { %v467_v62 = vadd.f32 %v461_v57, %v445_v11  ;;  %v708_v41 = vpop.permute.xlu1 %707  ;;  %v507_v22 = vmul.f32 %v500_v25, %v500_v25 }
 0x17b   : > { %v508_v53 = vmul.f32 %v501_v61, %v501_v61  ;;  %v714_v54 = vsel %vm436_vm13, %v706_v37, %v708_v41 }
 0x17c   : > { %v499_v47 = vsub.f32 %v467_v62, %v492_v38  ;;  %v513_v8 = vrot.slane %v507_v22, 2  ;;  %v720_v11 = vadd.f32 %v714_v54, %v2757_v29  ;;  %v735_v62 = vsel %vm3706_vm14, %v727_v14, %v729_v46 }
 0x17d   : > { %v514_v50 = vrot.slane %v508_v53, 2  ;;  %v723_v32 = vpop.permute.xlu0 %722 }
 0x17e   : > { %v725_v19 = vpop.permute.xlu1 %724  ;;  %v502_v9 = vmul.f32 0.125, %v499_v47  ;;  %v741_v53 = vadd.f32 %v735_v62, %v720_v11 }
 0x17f   : > { %v515_v48 = vsel %vm381_vm12, %v513_v8, %v514_v50  ;;  %v734_v29 = vsel %vm3706_vm14, %v723_v32, %v725_v19 }
 0x180   : > { %518 = vrot.lane.b32.xlu0 %v515_v48, %s2359_s23  ;;  %v509_v39 = vmul.f32 %v502_v9, %v502_v9 }
 0x181   : > { %v702_v16 = vpop.permute.xlu0 %701 }
 0x182   : > { %v704_v13 = vpop.permute.xlu1 %703  ;;  %v516_v15 = vrot.slane %v509_v39, 2  ;;  %v766_v39 = vrot.slane %v741_v53, 6 }
 0x183   : > { %v713_v25 = vsel %vm436_vm13, %v702_v16, %v704_v13 }
 0x184   : > { %v517_v20 = vsel %vm381_vm12, %v514_v50, %v516_v15  ;;  %v719_v47 = vadd.f32 %v713_v25, %v2745_v21 }
 0x185   : > { %520 = vrot.lane.b32.xlu1 %v517_v20, %s2359_s23  ;;  %v3094_v38 = vpop.permute.xlu0 %1000 }
 0x186   : > { %v3092_v27 = vpop.permute.xlu1 %1002  ;;  %v740_v13 = vadd.f32 %v734_v29, %v719_v47 }
 0x189   : > { %v980_v43 = vpop.permute.xlu0 %979 }
 0x18a   : > { %v982_v40 = vpop.permute.xlu1 %981 }
 0x18d   : > { %v757_v10 = vpop.permute.xlu0 %756 }
 0x18e   : > { %v759_v36 = vpop.permute.xlu1 %758 }
 0x18f   : > { %v760_v50 = vsel %vm3706_vm14, %v757_v10, %v759_v36 }
 0x191   : > { %v731_v56 = vpop.permute.xlu0 %730 }
 0x192   : > { %v733_v55 = vpop.permute.xlu1 %732 }
 0x193   : > { %v736_v14 = vsel %vm3706_vm14, %v731_v56, %v733_v55 }
 0x195   : > { %v748_v61 = vpop.permute.xlu0 %747 }
 0x196   : > { %v750_v57 = vpop.permute.xlu1 %749 }
 0x197   : > { %v751_v22 = vsel %vm436_vm13, %v748_v61, %v750_v57 }
 0x198   : > { %v753_v8 = vadd.f32 %v751_v22, %v2768_v34 }
 0x199   : > { %v710_v9 = vpop.permute.xlu0 %709 }
 0x19a   : > { %v762_v41 = vadd.f32 %v760_v50, %v753_v8  ;;  %v712_v37 = vpop.permute.xlu1 %711 }
 0x19b   : > { %v715_v48 = vsel %vm436_vm13, %v710_v9, %v712_v37 }
 0x19c   : > { %v765_v16 = vrot.slane %v762_v41, 6  ;;  %v721_v46 = vadd.f32 %v715_v48, %v2755_v26  ;;  %v988_v48 = vsel %vm436_vm13, %v980_v43, %v982_v40 }
 0x19d   : > { %v3111_v36 = vpop.permute.xlu0 %1274 }
 0x19e   : > { %v767_v21 = vsel %vm490_vm15, %v765_v16, %v766_v39  ;;  %v771_v15 = vsub.f32 %v740_v13, %v765_v16  ;;  %v742_v34 = vadd.f32 %v736_v14, %v721_v46  ;;  %v3109_v20 = vpop.permute.xlu1 %1276  ;;  %v994_v16 = vadd.f32 %v988_v48, %v2805_v44 }
 0x19f   : > { %v772_v10 = vsub.f32 %v741_v53, %v767_v21 }
 0x1a0   : > { %v774_v54 = vmul.f32 0.125, %v771_v15  ;;  %v773_v19 = vsub.f32 %v742_v34, %v766_v39  ;;  %v1009_v15 = vsel %vm3706_vm14, %v3094_v38, %v3092_v27 }
 0x1a1   : > { %v775_v32 = vmul.f32 0.125, %v772_v10  ;;  %v1254_v61 = vpop.permute.xlu0 %1253  ;;  %v1015_v10 = vadd.f32 %v1009_v15, %v994_v16 }
 0x1a2   : > { %v781_v11 = vmul.f32 %v774_v54, %v774_v54  ;;  %v776_v25 = vmul.f32 0.125, %v773_v19  ;;  %v1256_v57 = vpop.permute.xlu1 %1255 }
 0x1a3   : > { %v782_v62 = vmul.f32 %v775_v32, %v775_v32 }
 0x1a4   : > { %v783_v26 = vmul.f32 %v776_v25, %v776_v25  ;;  %v787_v22 = vrot.slane %v781_v11, 2 }
 0x1a5   : > { %v788_v55 = vrot.slane %v782_v62, 2  ;;  %v997_v47 = vpop.permute.xlu0 %996  ;;  %v1040_v62 = vrot.slane %v1015_v10, 6 }
 0x1a6   : > { %v999_v56 = vpop.permute.xlu1 %998  ;;  %v790_v8 = vrot.slane %v783_v26, 2 }
 0x1a7   : > { %v789_v50 = vsel %vm381_vm12, %v787_v22, %v788_v55  ;;  %v1008_v11 = vsel %vm3706_vm14, %v997_v47, %v999_v56 }
 0x1a8   : > { %792 = vrot.lane.b32.xlu0 %v789_v50, %s2359_s23  ;;  %v791_v53 = vsel %vm381_vm12, %v788_v55, %v790_v8 }
 0x1a9   : > { %794 = vrot.lane.b32.xlu1 %v791_v53, %s2359_s23  ;;  %v976_v37 = vpop.permute.xlu0 %975 }
 0x1aa   : > { %v978_v41 = vpop.permute.xlu1 %977 }
 0x1ab   : > { %v987_v46 = vsel %vm436_vm13, %v976_v37, %v978_v41 }
 0x1ac   : > { %v993_v54 = vadd.f32 %v987_v46, %v2849_v49 }
 0x1ad   : > { %v1031_v29 = vpop.permute.xlu0 %1030 }
 0x1ae   : > { %v1033_v9 = vpop.permute.xlu1 %1032  ;;  %v1014_v26 = vadd.f32 %v1008_v11, %v993_v54 }
 0x1af   : > { %v1034_v40 = vsel %vm3706_vm14, %v1031_v29, %v1033_v9 }
 0x1b1   : > { %v1005_v13 = vpop.permute.xlu0 %1004 }
 0x1b2   : > { %v1007_v39 = vpop.permute.xlu1 %1006 }
 0x1b3   : > { %v1010_v38 = vsel %vm3706_vm14, %v1005_v13, %v1007_v39 }
 0x1b5   : > { %v1022_v21 = vpop.permute.xlu0 %1021 }
 0x1b6   : > { %v1024_v14 = vpop.permute.xlu1 %1023 }
 0x1b7   : > { %v1025_v34 = vsel %vm436_vm13, %v1022_v21, %v1024_v14 }
 0x1b8   : > { %v1027_v19 = vadd.f32 %v1025_v34, %v2851_v51 }
 0x1b9   : > { %v984_v44 = vpop.permute.xlu0 %983 }
 0x1ba   : > { %v1036_v43 = vadd.f32 %v1034_v40, %v1027_v19  ;;  %v986_v32 = vpop.permute.xlu1 %985 }
 0x1bb   : > { %v989_v25 = vsel %vm436_vm13, %v984_v44, %v986_v32 }
 0x1bc   : > { %v1039_v22 = vrot.slane %v1036_v43, 6  ;;  %v995_v27 = vadd.f32 %v989_v25, %v2833_v30  ;;  %v1262_v30 = vsel %vm436_vm13, %v1254_v61, %v1256_v57  ;;  %v1283_v57 = vsel %vm3706_vm14, %v3111_v36, %v3109_v20 }
 0x1bd   : > { %v1271_v50 = vpop.permute.xlu0 %1270 }
 0x1be   : > { %v1041_v49 = vsel %vm490_vm15, %v1039_v22, %v1040_v62  ;;  %v1045_v55 = vsub.f32 %v1014_v26, %v1039_v22  ;;  %v1016_v51 = vadd.f32 %v1010_v38, %v995_v27  ;;  %v1273_v8 = vpop.permute.xlu1 %1272 }
 0x1bf   : > { %v1046_v53 = vsub.f32 %v1015_v10, %v1041_v49  ;;  %v1268_v10 = vadd.f32 %v1262_v30, %v2911_v60  ;;  %v1282_v22 = vsel %vm3706_vm14, %v1271_v50, %v1273_v8 }
 0x1c0   : > { %v1048_v41 = vmul.f32 0.125, %v1045_v55  ;;  %v1047_v37 = vsub.f32 %v1016_v51, %v1040_v62 }
 0x1c1   : > { %v1049_v9 = vmul.f32 0.125, %v1046_v53  ;;  %v1250_v48 = vpop.permute.xlu0 %1249  ;;  %v1289_v32 = vadd.f32 %v1283_v57, %v1268_v10 }
 0x1c2   : > { %v1055_v56 = vmul.f32 %v1048_v41, %v1048_v41  ;;  %v1050_v47 = vmul.f32 0.125, %v1047_v37  ;;  %v1252_v29 = vpop.permute.xlu1 %1251 }
 0x1c3   : > { %v1056_v16 = vmul.f32 %v1049_v9, %v1049_v9  ;;  %v1261_v19 = vsel %vm436_vm13, %v1250_v48, %v1252_v29  ;;  %v1314_v55 = vrot.slane %v1289_v32, 6 }
 0x1c4   : > { %v1057_v46 = vmul.f32 %v1050_v47, %v1050_v47  ;;  %v1061_v14 = vrot.slane %v1055_v56, 2  ;;  %v1267_v44 = vadd.f32 %v1261_v19, %v2951_v6 }
 0x1c5   : > { %v1062_v39 = vrot.slane %v1056_v16, 2  ;;  %v1305_v21 = vpop.permute.xlu0 %1304 }
 0x1c6   : > { %v1307_v13 = vpop.permute.xlu1 %1306  ;;  %v1064_v15 = vrot.slane %v1057_v46, 2  ;;  %v1288_v38 = vadd.f32 %v1282_v22, %v1267_v44 }
 0x1c7   : > { %v1063_v34 = vsel %vm381_vm12, %v1061_v14, %v1062_v39  ;;  %v1308_v11 = vsel %vm3706_vm14, %v1305_v21, %v1307_v13 }
 0x1c8   : > { %1066 = vrot.lane.b32.xlu0 %v1063_v34, %s2359_s23  ;;  %v1065_v54 = vsel %vm381_vm12, %v1062_v39, %v1064_v15  ;;  %v2362_v39 = vmov 0.0  }
 0x1c9   : > { %1068 = vrot.lane.b32.xlu1 %v1065_v54, %s2359_s23  ;;  %v1296_v43 = vpop.permute.xlu0 %1295  ;;  %1442 = vst.msk [vmem:[#allocation2] ss:$8 sm:$0x3] %vm2661_vm7, %v2362_v39  ;;  %1444 = vst.msk [vmem:[#allocation2 + $0x21] ss:$8 sm:$0x3] %vm2661_vm7, %v2362_v39 }
 0x1ca   : > { %v1298_v40 = vpop.permute.xlu1 %1297 }
 0x1cb   : > { %v1299_v61 = vsel %vm436_vm13, %v1296_v43, %v1298_v40 }
 0x1cc   : > { %v1301_v60 = vadd.f32 %v1299_v61, %v2965_v31 }
 0x1cd   : > { %v1258_v26 = vpop.permute.xlu0 %1257 }
 0x1ce   : > { %v1310_v25 = vadd.f32 %v1308_v11, %v1301_v60  ;;  %v1260_v62 = vpop.permute.xlu1 %1259 }
 0x1cf   : > { %v1263_v27 = vsel %vm436_vm13, %v1258_v26, %v1260_v62 }
 0x1d0   : > { %v1313_v49 = vrot.slane %v1310_v25, 6  ;;  %v1269_v36 = vadd.f32 %v1263_v27, %v2982_v35 }
 0x1d1   : > { %v1279_v53 = vpop.permute.xlu0 %1278 }
 0x1d2   : > { %v1319_v20 = vsub.f32 %v1288_v38, %v1313_v49  ;;  %v1281_v51 = vpop.permute.xlu1 %1280  ;;  %v1315_v6 = vsel %vm490_vm15, %v1313_v49, %v1314_v55 }
 0x1d3   : > { %v1284_v31 = vsel %vm3706_vm14, %v1279_v53, %v1281_v51  ;;  %v1320_v41 = vsub.f32 %v1289_v32, %v1315_v6 }
 0x1d4   : > { %v1322_v37 = vmul.f32 0.125, %v1319_v20  ;;  %v1290_v9 = vadd.f32 %v1284_v31, %v1269_v36 }
 0x1d5   : > { %v1323_v56 = vmul.f32 0.125, %v1320_v41  ;;  %v3161_v13 = vpop.permute.xlu0 %402 }
 0x1d6   : > { %v1329_v47 = vmul.f32 %v1322_v37, %v1322_v37  ;;  %v1321_v8 = vsub.f32 %v1290_v9, %v1314_v55  ;;  %v3163_v21 = vpop.permute.xlu1 %404  ;;  %v409_v19 = vsub.f32 %v2751_v24, %v3161_v13 }
 0x1d7   : > { %v1330_v29 = vmul.f32 %v1323_v56, %v1323_v56  ;;  %v411_v40 = vsub.f32 %v2733_v7, %v3163_v21 }
 0x1d8   : > { %v1324_v50 = vmul.f32 0.125, %v1321_v8  ;;  %v1335_v48 = vrot.slane %v1329_v47, 2  ;;  %v413_v57 = vmul.f32 0.125, %v409_v19 }
 0x1d9   : > { %v1336_v46 = vrot.slane %v1330_v29, 2  ;;  %v3165_v15 = vpop.permute.xlu0 %679  ;;  %v415_v32 = vmul.f32 0.125, %v411_v40 }
 0x1da   : > { %v1331_v16 = vmul.f32 %v1324_v50, %v1324_v50  ;;  %v3167_v34 = vpop.permute.xlu1 %681  ;;  %v504_v60 = vmul.f32 %v413_v57, %v413_v57  ;;  %v686_v11 = vsub.f32 %v2813_v63, %v3165_v15 }
 0x1db   : > { %v1337_v35 = vsel %vm381_vm12, %v1335_v48, %v1336_v46  ;;  %v506_v62 = vmul.f32 %v415_v32, %v415_v32  ;;  %v688_v24 = vsub.f32 %v2807_v59, %v3167_v34 }
 0x1dc   : > { %v1338_v14 = vrot.slane %v1331_v16, 2  ;;  %1340 = vrot.lane.b32.xlu0 %v1337_v35, %s2359_s23  ;;  %v690_v22 = vmul.f32 0.125, %v686_v11 }
 0x1dd   : > { %v3169_v10 = vpop.permute.xlu0 %953  ;;  %v692_v27 = vmul.f32 0.125, %v688_v24 }
 0x1de   : > { %v1339_v30 = vsel %vm381_vm12, %v1336_v46, %v1338_v14  ;;  %v3171_v54 = vpop.permute.xlu1 %955  ;;  %v778_v55 = vmul.f32 %v690_v22, %v690_v22  ;;  %v960_v24 = vsub.f32 %v2870_v42, %v3169_v10  ;;  %v959_v42 = vsub.f32 %v3054_v23, %v3169_v10 }
 0x1df   : > { %1342 = vrot.lane.b32.xlu1 %v1339_v30, %s2359_s23  ;;  %v780_v20 = vmul.f32 %v692_v27, %v692_v27  ;;  %v962_v22 = vsub.f32 %v2867_v45, %v3171_v54  ;;  %v685_v27 = vsub.f32 %v3036_v4, %v3165_v15  ;;  %v1187_v4 = vrot.slane %v2918_v33, 1 }
 0x1e1   : > { %v3177_v43 = vpop.permute.xlu0 %1227  ;;  %v689_v45 = vmul.f32 0.125, %v685_v27 }
 0x1e2   : > { %v3179_v61 = vpop.permute.xlu1 %1229 }
 0x1e3   : > { %v777_v10 = vmul.f32 %v689_v45, %v689_v45 }
 0x1f2   : > { %v3181_v44 = vpop.permute.xlu0 %518 }
 0x1f3   : > { %v525_v7 = vadd.f32 %v3181_v44, %v504_v60 }
 0x1f5   : > { %v529_v38 = vadd.f32 1e-06, %v525_v7 }
 0x1f7   : > { %v3185_v25 = vpop.permute.xlu1 %520  ;;  %2156 = vrsqrt.f32 %v529_v38  ;;  %vm541_vm15 = vcmp.eq.f32.partialorder %v529_v38, inf  ;;  %vm543_vm14 = vcmp.eq.f32.partialorder %v529_v38, 0.0  ;;  %v544_v8 = vand.u32 2147483648, %v529_v38 }
 0x1f8   : > { %v527_v26 = vadd.f32 %v3185_v25, %v506_v62  ;;  %v408_v62 = vsub.f32 %v3018_v2, %v3161_v13  ;;  %v964_v13 = vmul.f32 0.125, %v960_v24 }
 0x1fa   : > { %v531_v49 = vadd.f32 1e-06, %v527_v26  ;;  %v410_v26 = vsub.f32 %v3015_v12, %v3163_v21  ;;  %v412_v2 = vmul.f32 0.125, %v408_v62  ;;  %v961_v12 = vsub.f32 %v3052_v52, %v3171_v54 }
 0x1fb   : > { %v966_v21 = vmul.f32 0.125, %v962_v22 }
 0x1fc   : > { %2158 = vrsqrt.f32 %v531_v49  ;;  %vm555_vm5 = vcmp.eq.f32.partialorder %v531_v49, inf  ;;  %v558_v48 = vand.u32 2147483648, %v531_v49  ;;  %vm557_vm2 = vcmp.eq.f32.partialorder %v531_v49, 0.0 }
 0x1fd   : > { %v503_v15 = vmul.f32 %v412_v2, %v412_v2 }
 0x201   : > { %v2157_v31 = vpop.eup %2156 }
 0x202   : > { %v540_v37 = vmul.f32 %v2157_v31, %v529_v38  ;;  %v965_v31 = vmul.f32 0.125, %v961_v12 }
 0x204   : > { %v542_v47 = vsel %vm541_vm15, %v529_v38, %v540_v37  ;;  %v1165_v38 = vld [vmem:[#allocation2 + $0x8] sm:$0xfe] }
 0x205   : > { %v545_v19 = vsel %vm543_vm14, %v544_v8, %v542_v47  ;;  %v1211_v8 = vrot.slane %v2909_v58, 2 }
 0x206   : > { %v2159_v41 = vpop.eup %2158 }
 0x207   : > { %v554_v9 = vmul.f32 %v2159_v41, %v531_v49  ;;  %v1054_v41 = vmul.f32 %v966_v21, %v966_v21 }
 0x209   : > { %v556_v46 = vsel %vm555_vm5, %v531_v49, %v554_v9  ;;  %v687_v49 = vsub.f32 %v3034_v3, %v3167_v34  ;;  %v1052_v3 = vmul.f32 %v964_v13, %v964_v13 }
 0x20a   : > { %v559_v60 = vsel %vm557_vm2, %v558_v48, %v556_v46  ;;  %v1210_v48 = vrot.slane %v2949_v5, 2 }
 0x21a   : > { %v3191_v36 = vpop.permute.xlu0 %792 }
 0x21b   : > { %v799_v63 = vadd.f32 %v3191_v36, %v778_v55  ;;  %v3194_v51 = vpop.permute.xlu1 %794  ;;  %v1166_v55 = vld [vmem:[#allocation2 + $0x28] sm:$0x1] }
 0x21c   : > { %v801_v59 = vadd.f32 %v3194_v51, %v780_v20  ;;  %v414_v20 = vmul.f32 0.125, %v410_v26 }
 0x21d   : > { %v803_v53 = vadd.f32 1e-06, %v799_v63  ;;  %v1172_v63 = vmul.f32 2.0, %v1165_v38 }
 0x21e   : > { %v805_v6 = vadd.f32 1e-06, %v801_v59  ;;  %v1176_v59 = vmul.f32 2.0, %v1166_v55  ;;  %v505_v34 = vmul.f32 %v414_v20, %v414_v20 }
 0x21f   : > { %2160 = vrsqrt.f32 %v803_v53  ;;  %vm815_vm1 = vcmp.eq.f32.partialorder %v803_v53, inf  ;;  %v818_v16 = vand.u32 2147483648, %v803_v53  ;;  %vm817_vm8 = vcmp.eq.f32.partialorder %v803_v53, 0.0 }
 0x220   : > { %2162 = vrsqrt.f32 %v805_v6  ;;  %vm829_vm10 = vcmp.eq.f32.partialorder %v805_v6, inf  ;;  %v832_v30 = vand.u32 2147483648, %v805_v6  ;;  %vm831_vm9 = vcmp.eq.f32.partialorder %v805_v6, 0.0 }
 0x221   : > { %v1186_v37 = vrot.slane %v1172_v63, 1  ;;  %v1191_v9 = vrot.slane %v1176_v59, 1 }
 0x229   : > { %v2161_v56 = vpop.eup %2160 }
 0x22a   : > { %v814_v50 = vmul.f32 %v2161_v56, %v803_v53  ;;  %v2163_v29 = vpop.eup %2162  ;;  %v524_v56 = vadd.f32 %v3181_v44, %v503_v15 }
 0x22b   : > { %v828_v35 = vmul.f32 %v2163_v29, %v805_v6 }
 0x22c   : > { %v816_v14 = vsel %vm815_vm1, %v803_v53, %v814_v50  ;;  %v691_v53 = vmul.f32 0.125, %v687_v49  ;;  %v526_v50 = vadd.f32 %v3185_v25, %v505_v34  ;;  %v1235_v49 = vsub.f32 %v3066_v0, %v3179_v61 }
 0x22d   : > { %v819_v40 = vsel %vm817_vm8, %v818_v16, %v816_v14  ;;  %v830_v57 = vsel %vm829_vm10, %v805_v6, %v828_v35  ;;  %v963_v6 = vmul.f32 0.125, %v959_v42  ;;  %v798_v16 = vadd.f32 %v3191_v36, %v777_v10 }
 0x22e   : > { %v3197_v32 = vadd.f32 %v819_v40, %v545_v19  ;;  %v833_v11 = vsel %vm831_vm9, %v832_v30, %v830_v57  ;;  %v779_v47 = vmul.f32 %v691_v53, %v691_v53  ;;  %v1053_v14 = vmul.f32 %v965_v31, %v965_v31 }
 0x22f   : > { %v3203_v7 = vadd.f32 %v833_v11, %v559_v60  ;;  %v1051_v29 = vmul.f32 %v963_v6, %v963_v6  ;;  %v1188_v35 = vsel %vm356_vm11, %v1186_v37, %v1187_v4  ;;  %v1192_v19 = vsel %vm356_vm11, %v1187_v4, %v1191_v9 }
 0x230   : > { %v800_v30 = vadd.f32 %v3194_v51, %v779_v47  ;;  %v1215_v40 = vrot.slane %v2980_v18, 2  ;;  %v3227_v57 = vadd.f32 1e-06, %v524_v56  ;;  %v3229_v60 = vadd.f32 1e-06, %v526_v50 }
 0x231   : > { %v1198_v36 = vadd.f32 %v1188_v35, %v2963_v17  ;;  %v3232_v11 = vadd.f32 1e-06, %v798_v16  ;;  %v1200_v62 = vadd.f32 %v1192_v19, %v2909_v58  ;;  %v1212_v51 = vsel %vm381_vm12, %v1210_v48, %v1211_v8 }
 0x232   : > { %v3236_v24 = vadd.f32 1e-06, %v800_v30  ;;  %v1216_v18 = vsel %vm381_vm12, %v1211_v8, %v1215_v40  ;;  %v1233_v58 = vsub.f32 %v3068_v1, %v3177_v43  ;;  %v1239_v21 = vmul.f32 0.125, %v1235_v49 }
 0x233   : > { %v1222_v17 = vadd.f32 %v1212_v51, %v1198_v36  ;;  %v1224_v27 = vadd.f32 %v1216_v18, %v1200_v62  ;;  %vm534_vm9 = vcmp.eq.f32.partialorder %v3227_v57, inf  ;;  %v537_v50 = vand.u32 2147483648, %v3227_v57 }
 0x234   : > { %v1237_v42 = vmul.f32 0.125, %v1233_v58  ;;  %vm548_vm10 = vcmp.eq.f32.partialorder %v3229_v60, inf  ;;  %vm808_vm14 = vcmp.eq.f32.partialorder %v3232_v11, inf  ;;  %vm822_vm15 = vcmp.eq.f32.partialorder %v3236_v24, inf }
 0x235   : > { %v1234_v38 = vsub.f32 %v1222_v17, %v3177_v43  ;;  %v1236_v55 = vsub.f32 %v1224_v27, %v3179_v61  ;;  %v811_v62 = vand.u32 2147483648, %v3232_v11  ;;  %v825_v18 = vand.u32 2147483648, %v3236_v24 }
 0x236   : > { %v1325_v4 = vmul.f32 %v1237_v42, %v1237_v42 }
 0x237   : > { %v1238_v13 = vmul.f32 0.125, %v1234_v38  ;;  %v1240_v1 = vmul.f32 0.125, %v1236_v55 }
 0x239   : > { %v1326_v6 = vmul.f32 %v1238_v13, %v1238_v13  ;;  %v1328_v37 = vmul.f32 %v1240_v1, %v1240_v1  ;;  %v3306_v1 = vstv %s268_s9 }
 0x23a   : > { %v1067_v23 = vpop.permute.xlu0 %1066 }
 0x23b   : > { %v1073_v52 = vadd.f32 %v1067_v23, %v1052_v3  ;;  %v1069_v54 = vpop.permute.xlu1 %1068  ;;  %v1072_v25 = vadd.f32 %v1067_v23, %v1051_v29 }
 0x23c   : > { %v1075_v33 = vadd.f32 %v1069_v54, %v1054_v41  ;;  %v1074_v5 = vadd.f32 %v1069_v54, %v1053_v14  ;;  %v1327_v41 = vmul.f32 %v1239_v21, %v1239_v21 }
 0x23d   : > { %v1077_v46 = vadd.f32 1e-06, %v1073_v52  ;;  %v3240_v26 = vadd.f32 1e-06, %v1072_v25 }
 0x23e   : > { %v1079_v44 = vadd.f32 1e-06, %v1075_v33  ;;  %v3243_v22 = vadd.f32 1e-06, %v1074_v5 }
 0x23f   : > { %2164 = vrsqrt.f32 %v1077_v46  ;;  %vm1089_vm1 = vcmp.eq.f32.partialorder %v1077_v46, inf  ;;  %v1092_v63 = vand.u32 2147483648, %v1077_v46  ;;  %vm1091_vm2 = vcmp.eq.f32.partialorder %v1077_v46, 0.0 }
 0x240   : > { %2166 = vrsqrt.f32 %v1079_v44  ;;  %vm1103_vm5 = vcmp.eq.f32.partialorder %v1079_v44, inf  ;;  %v1106_v0 = vand.u32 2147483648, %v1079_v44  ;;  %vm1105_vm8 = vcmp.eq.f32.partialorder %v1079_v44, 0.0 }
 0x241   : > { %2168 = vrsqrt.f32 %v3227_v57  ;;  %v1085_v58 = vand.u32 2147483648, %v3240_v26  ;;  %v1099_v38 = vand.u32 2147483648, %v3243_v22 }
 0x242   : > { %2170 = vrsqrt.f32 %v3229_v60 }
 0x243   : > { %2172 = vrsqrt.f32 %v3232_v11 }
 0x244   : > { %2174 = vrsqrt.f32 %v3236_v24 }
 0x245   : > { %2176 = vrsqrt.f32 %v3240_v26 }
 0x246   : > { %2178 = vrsqrt.f32 %v3243_v22 }
 0x249   : > { %v2165_v2 = vpop.eup %2164 }
 0x24a   : > { %v1088_v20 = vmul.f32 %v2165_v2, %v1077_v46  ;;  %v2167_v12 = vpop.eup %2166 }
 0x24b   : > { %v2169_v45 = vpop.eup %2168  ;;  %v1102_v43 = vmul.f32 %v2167_v12, %v1079_v44 }
 0x24c   : > { %v1090_v59 = vsel %vm1089_vm1, %v1077_v46, %v1088_v20  ;;  %v2171_v53 = vpop.eup %2170  ;;  %v533_v56 = vmul.f32 %v2169_v45, %v3227_v57  ;;  %vm1082_vm1 = vcmp.eq.f32.partialorder %v3240_v26, inf }
 0x24d   : > { %v1093_v61 = vsel %vm1091_vm2, %v1092_v63, %v1090_v59  ;;  %v2173_v15 = vpop.eup %2172  ;;  %v1104_v34 = vsel %vm1103_vm5, %v1079_v44, %v1102_v43  ;;  %v547_v33 = vmul.f32 %v2171_v53, %v3229_v60  ;;  %vm1096_vm2 = vcmp.eq.f32.partialorder %v3243_v22, inf }
 0x24e   : > { %v3256_v3 = vadd.f32 %v1093_v61, %v3197_v32  ;;  %v2175_v31 = vpop.eup %2174  ;;  %v1341_v23 = vpop.permute.xlu0 %1340  ;;  %v1107_v10 = vsel %vm1105_vm8, %v1106_v0, %v1104_v34  ;;  %v807_v16 = vmul.f32 %v2173_v15, %v3232_v11  ;;  %v535_v19 = vsel %vm534_vm9, %v3227_v57, %v533_v56 }
 0x24f   : > { %v2177_v9 = vpop.eup %2176  ;;  %v1346_v52 = vadd.f32 %v1341_v23, %v1325_v4  ;;  %v1347_v54 = vadd.f32 %v1341_v23, %v1326_v6  ;;  %v3261_v8 = vadd.f32 %v1107_v10, %v3203_v7  ;;  %v821_v46 = vmul.f32 %v2175_v31, %v3236_v24 }
 0x250   : > { %v2179_v32 = vpop.eup %2178  ;;  %v551_v7 = vand.u32 2147483648, %v3229_v60  ;;  %v1081_v40 = vmul.f32 %v2177_v9, %v3240_v26  ;;  %v549_v5 = vsel %vm548_vm10, %v3229_v60, %v547_v33  ;;  %v809_v36 = vsel %vm808_vm14, %v3232_v11, %v807_v16 }
 0x251   : > { %v1343_v47 = vpop.permute.xlu1 %1342  ;;  %v3267_v14 = vadd.f32 1e-06, %v1346_v52  ;;  %v3269_v35 = vadd.f32 1e-06, %v1347_v54  ;;  %v1095_v25 = vmul.f32 %v2179_v32, %v3243_v22  ;;  %v823_v51 = vsel %vm822_vm15, %v3236_v24, %v821_v46 }
 0x252   : > { %v1348_v29 = vadd.f32 %v1343_v47, %v1327_v41  ;;  %v1349_v48 = vadd.f32 %v1343_v47, %v1328_v37  ;;  %vm810_vm5 = vcmp.eq.f32.partialorder %v3232_v11, 0.0  ;;  %vm824_vm8 = vcmp.eq.f32.partialorder %v3236_v24, 0.0 }
 0x253   : > { %2180 = vrsqrt.f32 %v3267_v14  ;;  %v1083_v17 = vsel %vm1082_vm1, %v3240_v26, %v1081_v40  ;;  %v1097_v27 = vsel %vm1096_vm2, %v3243_v22, %v1095_v25  ;;  %v812_v49 = vsel %vm810_vm5, %v811_v62, %v809_v36 }
 0x254   : > { %v3273_v30 = vadd.f32 1e-06, %v1348_v29  ;;  %v3275_v44 = vadd.f32 1e-06, %v1349_v48  ;;  %2182 = vrsqrt.f32 %v3269_v35  ;;  %v826_v55 = vsel %vm824_vm8, %v825_v18, %v823_v51 }
 0x255   : > { %vm536_vm9 = vcmp.eq.f32.partialorder %v3227_v57, 0.0  ;;  %vm550_vm10 = vcmp.eq.f32.partialorder %v3229_v60, 0.0  ;;  %vm1084_vm14 = vcmp.eq.f32.partialorder %v3240_v26, 0.0  ;;  %vm1098_vm15 = vcmp.eq.f32.partialorder %v3243_v22, 0.0 }
 0x256   : > { %2184 = vrsqrt.f32 %v3273_v30  ;;  %v538_v11 = vsel %vm536_vm9, %v537_v50, %v535_v19  ;;  %v1086_v24 = vsel %vm1084_vm14, %v1085_v58, %v1083_v17  ;;  %v552_v2 = vsel %vm550_vm10, %v551_v7, %v549_v5 }
 0x257   : > { %2186 = vrsqrt.f32 %v3275_v44  ;;  %v1100_v42 = vsel %vm1098_vm15, %v1099_v38, %v1097_v27  ;;  %v834_v13 = vadd.f32 %v812_v49, %v538_v11  ;;  %v836_v20 = vadd.f32 %v826_v55, %v552_v2 }
 0x258   : > { %vm1356_vm1 = vcmp.eq.f32.partialorder %v3267_v14, inf  ;;  %vm1358_vm2 = vcmp.eq.f32.partialorder %v3267_v14, 0.0  ;;  %v1359_v26 = vand.u32 2147483648, %v3267_v14  ;;  %vm1363_vm5 = vcmp.eq.f32.partialorder %v3269_v35, inf }
 0x259   : > { %v1108_v21 = vadd.f32 %v1086_v24, %v834_v13  ;;  %v1110_v63 = vadd.f32 %v1100_v42, %v836_v20  ;;  %vm1365_vm8 = vcmp.eq.f32.partialorder %v3269_v35, 0.0  ;;  %v1366_v43 = vand.u32 2147483648, %v3269_v35 }
 0x25a   : > { %vm1370_vm9 = vcmp.eq.f32.partialorder %v3273_v30, inf  ;;  %vm1372_vm10 = vcmp.eq.f32.partialorder %v3273_v30, 0.0  ;;  %v1373_v0 = vand.u32 2147483648, %v3273_v30  ;;  %vm1377_vm14 = vcmp.eq.f32.partialorder %v3275_v44, inf }
 0x25b   : > { %v1380_v37 = vand.u32 2147483648, %v3275_v44  ;;  %vm1379_vm15 = vcmp.eq.f32.partialorder %v3275_v44, 0.0 }
 0x25d   : > { %v2181_v12 = vpop.eup %2180 }
 0x25e   : > { %v2183_v57 = vpop.eup %2182  ;;  %v1355_v60 = vmul.f32 %v2181_v12, %v3267_v14 }
 0x25f   : > { %v1362_v45 = vmul.f32 %v2183_v57, %v3269_v35 }
 0x260   : > { %v2185_v22 = vpop.eup %2184  ;;  %v1357_v4 = vsel %vm1356_vm1, %v3267_v14, %v1355_v60 }
 0x261   : > { %v2187_v59 = vpop.eup %2186  ;;  %v1369_v53 = vmul.f32 %v2185_v22, %v3273_v30  ;;  %v1360_v15 = vsel %vm1358_vm2, %v1359_v26, %v1357_v4  ;;  %v1364_v6 = vsel %vm1363_vm5, %v3269_v35, %v1362_v45 }
 0x262   : > { %v1376_v61 = vmul.f32 %v2187_v59, %v3275_v44  ;;  %v1367_v34 = vsel %vm1365_vm8, %v1366_v43, %v1364_v6  ;;  %v3323_v31 = vadd.f32 %v1360_v15, %v1108_v21 }
 0x263   : > { %v1371_v41 = vsel %vm1370_vm9, %v3273_v30, %v1369_v53  ;;  %v3328_v23 = vadd.f32 %v1367_v34, %v3256_v3  ;;  %vm3722_vm9 = vcmask 7168  }
 0x264   : > { %v1374_v10 = vsel %vm1372_vm10, %v1373_v0, %v1371_v41  ;;  %v1378_v9 = vsel %vm1377_vm14, %v3275_v44, %v1376_v61  ;;  %vm1387_vm1 = vcmp.ge.f32.partialorder %v3323_v31, %v3306_v1  ;;  %vm3723_vm10 = vcmask 0  }
 0x265   : > { %v1381_v56 = vsel %vm1379_vm15, %v1380_v37, %v1378_v9  ;;  %v3334_v52 = vadd.f32 %v1374_v10, %v1110_v63  ;;  %vm1388_vm2 = vcmp.ge.f32.partialorder %v3328_v23, %v3306_v1  ;;  %v3339_v54 = vsel %vm1387_vm1, 1.0, %v2362_v39 }
 0x266   : > { %v3342_v3 = vadd.f32 %v1381_v56, %v3261_v8  ;;  %v3345_v47 = vsel %vm1388_vm2, 1.0, %v2362_v39  ;;  %v1403_v32 = vrot.slane %v3339_v54, 7  ;;  %vm3724_vm14 = vcmask 15368   ;;  %vm3727_vm2 = vmmov %vm3722_vm9 }
 0x267   : > { %vm1389_vm5 = vcmp.ge.f32.partialorder %v3334_v52, %v3306_v1  ;;  %v1404_v50 = vrot.slane %v3345_v47, 7  ;;  %v2146_v8 = vpack.i.bf16 %v3345_v47, %v3339_v54  ;;  %vm3725_vm15 = vcmask 1047560  }
 0x268   : > { %vm1390_vm8 = vcmp.ge.f32.partialorder %v3342_v3, %v3306_v1  ;;  %v3354_v33 = vsel %vm1389_vm5, 1.0, %v2362_v39  ;;  %vm3726_vm1 = vcmask 1040392   ;;  %vm3728_vm5 = vcmask 8200  }
 0x269   : > { %v3359_v29 = vsel %vm1390_vm8, 1.0, %v2362_v39  ;;  %v1405_v48 = vrot.slane %v3354_v33, 7  ;;  %v2131_v16 = vpack.i.bf16 %v1404_v50, %v1403_v32  ;;  %vm3729_vm8 = vmmov %vm3723_vm10 }
 0x26a   : > { %v1407_v46 = vrot.slane %v3359_v29, 7  ;;  %v2151_v14 = vpack.i.bf16 %v3359_v29, %v3354_v33 }
 0x26b   : > { %v1406_v35 = vsel %vm273_vm0, %v1403_v32, %v1405_v48  ;;  %2132 = vrot.lane.b32.xlu0 %v2131_v16, %s2361_s5 }
 0x26c   : > { %v2141_v7 = vpack.i.bf16 %v1407_v46, %v1405_v48  ;;  %v1408_v30 = vsel %vm273_vm0, %v1404_v50, %v1407_v46 }
 0x26d   : > { %v2136_v44 = vpack.i.bf16 %v1408_v30, %v1406_v35 }
 0x26f   : > { %2137 = vrot.lane.b32.xlu1 %v2136_v44, %s2361_s5  ;;  %2142 = vrot.lane.b32.xlu0 %v2141_v7, %s2361_s5 }
 0x2dd   : > { %v2133_v19 = vpop.permute.xlu0 %2132 }
 0x2de   : > { %v2135_v40 = vunpack.i.h.bf16 %v2133_v19  ;;  %v2134_v25 = vunpack.i.l.bf16 %v2133_v19 }
 0x2e0   : > { %v1421_v5 = vsel %vm436_vm13, %v2134_v25, %v2135_v40  ;;  %1431 = vst.msk [vmem:[#allocation2 + $0x8] sm:$0xfe] %vm288_vm4, %v2135_v40 }
 0x2e1   : > { %v2138_v36 = vpop.permute.xlu1 %2137  ;;  %1430 = vst.msk [vmem:[#allocation2] sm:$0xfe] %vm286_vm3, %v1421_v5  ;;  %v2143_v62 = vpop.permute.xlu0 %2142 }
 0x2e2   : > { %1439 = vst.msk [vmem:[#allocation2 + $0x8] sm:$0xfe] %vm313_vm6, %v2362_v39  ;;  %v2140_v51 = vunpack.i.h.bf16 %v2138_v36  ;;  %v2139_v18 = vunpack.i.l.bf16 %v2138_v36  ;;  %v2145_v17 = vunpack.i.h.bf16 %v2143_v62  ;;  %v2144_v27 = vunpack.i.l.bf16 %v2143_v62 }
 0x2e3   : > { %1436 = vst.msk [vmem:[#allocation2] sm:$0xfe] %vm288_vm4, %v2362_v39 }
 0x2e4   : > { %1433 = vst.msk [vmem:[#allocation2 + $0x18] sm:$0xff] %vm3722_vm9, %v2140_v51  ;;  %v1422_v58 = vsel %vm436_vm13, %v2139_v18, %v2140_v51  ;;  %v1423_v38 = vsel %vm436_vm13, %v2144_v27, %v2145_v17  ;;  %vm3730_vm9 = vcmask 1031168  }
 0x2e5   : > { %1435 = vst.msk [vmem:[#allocation2 + $0x28] sm:$0x1] %vm3723_vm10, %v2145_v17  ;;  %vm3731_vm10 = vmmov %vm3730_vm9 }
 0x2e6   : > { %1440 = vst.msk [vmem:[#allocation2 + $0x18] sm:$0xff] %vm3724_vm14, %v2362_v39  ;;  %vm3732_vm14 = vmmov %vm3730_vm9 }
 0x2e7   : > { %1432 = vst.msk [vmem:[#allocation2 + $0x10] sm:$0xff] %vm3725_vm15, %v1422_v58  ;;  %vm3733_vm15 = vmmov %vm3730_vm9 }
 0x2e8   : > { %1434 = vst.msk [vmem:[#allocation2 + $0x20] sm:$0x1] %vm3726_vm1, %v1423_v38  ;;  %vm3734_vm1 = vmmov %vm3730_vm9 }
 0x2e9   : > { %1437 = vst.msk [vmem:[#allocation2 + $0x10] sm:$0xff] %vm3727_vm2, %v2362_v39  ;;  %v1448_v49 = vld [vmem:[#allocation2 + $0x8] sm:$0xff]  ;;  %vm3735_vm2 = vmmov %vm3734_vm1 }
 0x2ea   : > { %1441 = vst.msk [vmem:[#allocation2 + $0x28] sm:$0x1] %vm3728_vm5, %v2362_v39  ;;  %1456 = vrot.lane.b32.xlu0 %v1448_v49, %s2361_s5  ;;  %v3392_v55 = vld [vmem:[#allocation2] sm:$0xff]  ;;  %v1495_v2 = vld [vmem:[#allocation2 + $0x8] sm:$0xfe]  ;;  %vm3737_vm5 = vmmov %vm3729_vm8 }
 0x2eb   : > { %1438 = vst.msk [vmem:[#allocation2 + $0x20] sm:$0x1] %vm3729_vm8, %v2362_v39  ;;  %1454 = vrot.lane.b32.xlu1 %v3392_v55, %s2361_s5  ;;  %v1482_v42 = vld [vmem:[#allocation2] sm:$0xfe]  ;;  %v1499_v13 = vrot.slane %v1495_v2, 1  ;;  %vm3738_vm8 = vcmask 1047560  }
 0x2ec   : > { %v1486_v12 = vrot.slane %v1482_v42, 1  ;;  %v1545_v53 = vld [vmem:[#allocation2 + $0x8] sm:$0xfc]  ;;  %v1532_v4 = vld [vmem:[#allocation2] sm:$0xfc] }
 0x2ed   : > { %v1449_v11 = vld [vmem:[#allocation2 + $0x18] sm:$0xff]  ;;  %v1549_v0 = vrot.slane %v1545_v53, 2  ;;  %v1536_v15 = vrot.slane %v1532_v4, 2 }
 0x2ee   : > { %1470 = vrot.lane.b32.xlu0 %v1448_v49, %s2360_s27  ;;  %v1500_v20 = vrot.slane %v1449_v11, 1  ;;  %v1550_v61 = vrot.slane %v1449_v11, 2 }
 0x2ef   : > { %1468 = vrot.lane.b32.xlu1 %v3392_v55, %s2360_s27 }
 0x2f0   : > { %v3399_v24 = vld [vmem:[#allocation2 + $0x10] sm:$0xff]  ;;  %v1501_v60 = vsel %vm356_vm11, %v1499_v13, %v1500_v20  ;;  %v1551_v37 = vsel %vm381_vm12, %v1549_v0, %v1550_v61  ;;  %v2363_v0 = vmov 1.0  }
 0x2f1   : > { %v1487_v21 = vrot.slane %v3399_v24, 1  ;;  %v1496_v63 = vld [vmem:[#allocation2 + $0x28] sm:$0x1]  ;;  %v1537_v6 = vrot.slane %v3399_v24, 2 }
 0x2f2   : > { %1460 = vrot.lane.b32.xlu0 %v1449_v11, %s2361_s5  ;;  %v1483_v57 = vld [vmem:[#allocation2 + $0x20] sm:$0x1]  ;;  %v1502_v26 = vrot.slane %v1496_v63, 1  ;;  %v1546_v34 = vld [vmem:[#allocation2 + $0x28] sm:$0x3] }
 0x2f3   : > { %1458 = vrot.lane.b32.xlu1 %v3399_v24, %s2361_s5  ;;  %v3410_v22 = vsel %vm356_vm11, %v1486_v12, %v1487_v21  ;;  %v1489_v45 = vrot.slane %v1483_v57, 1  ;;  %v1533_v41 = vld [vmem:[#allocation2 + $0x20] sm:$0x3]  ;;  %v1552_v10 = vrot.slane %v1546_v34, 2  ;;  %v1538_v9 = vsel %vm381_vm12, %v1536_v15, %v1537_v6 }
 0x2f4   : > { %v1503_v43 = vsel %vm356_vm11, %v1500_v20, %v1502_v26  ;;  %v1539_v56 = vrot.slane %v1533_v41, 2  ;;  %1608 = vst.msk [vmem:[#allocation2] ss:$8 sm:$0x3] %vm2661_vm7, %v2363_v0 }
 0x2f5   : > { %v3417_v59 = vsel %vm356_vm11, %v1487_v21, %v1489_v45  ;;  %v1553_v32 = vsel %vm381_vm12, %v1550_v61, %v1552_v10  ;;  %1610 = vst.msk [vmem:[#allocation2 + $0x21] ss:$8 sm:$0x3] %vm2661_vm7, %v2363_v0  ;;  %vm3736_vm7 = vcmask 1040392  }
 0x2f6   : > { %1474 = vrot.lane.b32.xlu0 %v1449_v11, %s2360_s27  ;;  %v1540_v50 = vsel %vm381_vm12, %v1537_v6, %v1539_v56 }
 0x2f7   : > { %1472 = vrot.lane.b32.xlu1 %v3399_v24, %s2360_s27 }
 0x2fa   : > { %1506 = vrot.lane.b32.xlu0 %v1501_v60, %s2361_s5 }
 0x2fb   : > { %1504 = vrot.lane.b32.xlu1 %v3410_v22, %s2361_s5 }
 0x2fe   : > { %1510 = vrot.lane.b32.xlu0 %v1503_v43, %s2361_s5 }
 0x2ff   : > { %1508 = vrot.lane.b32.xlu1 %v3417_v59, %s2361_s5 }
 0x302   : > { %1520 = vrot.lane.b32.xlu0 %v1501_v60, %s2360_s27 }
 0x303   : > { %1518 = vrot.lane.b32.xlu1 %v3410_v22, %s2360_s27 }
 0x306   : > { %1524 = vrot.lane.b32.xlu0 %v1503_v43, %s2360_s27 }
 0x307   : > { %1522 = vrot.lane.b32.xlu1 %v3417_v59, %s2360_s27 }
 0x30a   : > { %1556 = vrot.lane.b32.xlu0 %v1551_v37, %s2361_s5 }
 0x30b   : > { %1554 = vrot.lane.b32.xlu1 %v1538_v9, %s2361_s5 }
 0x30e   : > { %1560 = vrot.lane.b32.xlu0 %v1553_v32, %s2361_s5 }
 0x30f   : > { %1558 = vrot.lane.b32.xlu1 %v1540_v50, %s2361_s5 }
 0x312   : > { %1570 = vrot.lane.b32.xlu0 %v1551_v37, %s2360_s27 }
 0x313   : > { %1568 = vrot.lane.b32.xlu1 %v1538_v9, %s2360_s27 }
 0x316   : > { %1574 = vrot.lane.b32.xlu0 %v1553_v32, %s2360_s27 }
 0x317   : > { %1572 = vrot.lane.b32.xlu1 %v1540_v50, %s2360_s27 }
 0x35c   : > { %v1457_v48 = vpop.permute.xlu0 %1456 }
 0x35d   : > { %v1455_v16 = vpop.permute.xlu1 %1454 }
 0x35e   : > { %v1462_v62 = vsel %vm436_vm13, %v1455_v16, %v1457_v48 }
 0x35f   : > { %v1466_v17 = vmax.f32 %v3392_v55, %v1462_v62 }
 0x360   : > { %v1471_v46 = vpop.permute.xlu0 %1470 }
 0x361   : > { %v1469_v35 = vpop.permute.xlu1 %1468 }
 0x362   : > { %v1476_v51 = vsel %vm3730_vm9, %v1469_v35, %v1471_v46  ;;  %vm3740_vm9 = vmmov %vm3737_vm5 }
 0x363   : > { %v1480_v38 = vmax.f32 %v1466_v17, %v1476_v51 }
 0x364   : > { %v1461_v7 = vpop.permute.xlu0 %1460 }
 0x365   : > { %v1459_v30 = vpop.permute.xlu1 %1458  ;;  %v1493_v12 = vmax.f32 %v1480_v38, %v3410_v22 }
 0x366   : > { %v1463_v58 = vsel %vm436_vm13, %v1459_v30, %v1461_v7 }
 0x367   : > { %v1467_v2 = vmax.f32 %v3399_v24, %v1463_v58 }
 0x368   : > { %v1475_v44 = vpop.permute.xlu0 %1474 }
 0x369   : > { %v1473_v19 = vpop.permute.xlu1 %1472 }
 0x36a   : > { %v1477_v49 = vsel %vm3731_vm10, %v1473_v19, %v1475_v44  ;;  %vm3741_vm10 = vcmask 8200  }
 0x36b   : > { %v1481_v20 = vmax.f32 %v1467_v2, %v1477_v49 }
 0x36c   : > { %v1507_v40 = vpop.permute.xlu0 %1506 }
 0x36d   : > { %v1505_v25 = vpop.permute.xlu1 %1504  ;;  %v1494_v26 = vmax.f32 %v1481_v20, %v3417_v59 }
 0x36e   : > { %v1512_v13 = vsel %vm436_vm13, %v1505_v25, %v1507_v40 }
 0x36f   : > { %v1516_v57 = vmax.f32 %v1493_v12, %v1512_v13 }
 0x370   : > { %v1511_v5 = vpop.permute.xlu0 %1510 }
 0x371   : > { %v1509_v36 = vpop.permute.xlu1 %1508 }
 0x372   : > { %v1513_v60 = vsel %vm436_vm13, %v1509_v36, %v1511_v5 }
 0x373   : > { %v1517_v24 = vmax.f32 %v1494_v26, %v1513_v60 }
 0x374   : > { %v1521_v18 = vpop.permute.xlu0 %1520 }
 0x375   : > { %v1519_v27 = vpop.permute.xlu1 %1518 }
 0x376   : > { %v1526_v21 = vsel %vm3732_vm14, %v1519_v27, %v1521_v18  ;;  %vm3743_vm14 = vcmask 15368  }
 0x377   : > { %v1530_v45 = vmax.f32 %v1516_v57, %v1526_v21 }
 0x378   : > { %v1525_v11 = vpop.permute.xlu0 %1524 }
 0x379   : > { %v1523_v42 = vpop.permute.xlu1 %1522  ;;  %v1543_v15 = vmax.f32 %v1530_v45, %v1538_v9 }
 0x37a   : > { %v1527_v43 = vsel %vm3733_vm15, %v1523_v42, %v1525_v11  ;;  %vm3748_vm15 = vmmov %vm3734_vm1 }
 0x37b   : > { %v1531_v61 = vmax.f32 %v1517_v24, %v1527_v43 }
 0x37c   : > { %v1557_v63 = vpop.permute.xlu0 %1556 }
 0x37d   : > { %v1555_v55 = vpop.permute.xlu1 %1554  ;;  %v1544_v10 = vmax.f32 %v1531_v61, %v1540_v50 }
 0x37e   : > { %v1562_v22 = vsel %vm436_vm13, %v1555_v55, %v1557_v63 }
 0x37f   : > { %v1566_v34 = vmax.f32 %v1543_v15, %v1562_v22 }
 0x380   : > { %v1561_v53 = vpop.permute.xlu0 %1560 }
 0x381   : > { %v1559_v4 = vpop.permute.xlu1 %1558 }
 0x382   : > { %v1563_v41 = vsel %vm436_vm13, %v1559_v4, %v1561_v53 }
 0x383   : > { %v1567_v48 = vmax.f32 %v1544_v10, %v1563_v41 }
 0x384   : > { %v1571_v6 = vpop.permute.xlu0 %1570 }
 0x385   : > { %v1569_v59 = vpop.permute.xlu1 %1568 }
 0x386   : > { %v1576_v37 = vsel %vm3734_vm1, %v1569_v59, %v1571_v6 }
 0x387   : > { %v1580_v56 = vmax.f32 %v1566_v34, %v1576_v37 }
 0x388   : > { %v1575_v32 = vpop.permute.xlu0 %1574 }
 0x389   : > { %v1584_v16 = vrot.slane %v1580_v56, 7  ;;  %v1573_v46 = vpop.permute.xlu1 %1572 }
 0x38a   : > { %v1577_v28 = vsel %vm3735_vm2, %v1573_v46, %v1575_v32  ;;  %vm1776_vm2 = vcmask 15360  }
 0x38b   : > { %v1581_v35 = vmax.f32 %v1567_v48, %v1577_v28  ;;  %1587 = vrot.lane.b32.xlu1 %v1584_v16, %s2358_s15 }
 0x38d   : > { %v1585_v7 = vrot.slane %v1581_v35, 7 }
 0x38f   : > { %1591 = vrot.lane.b32.xlu1 %v1585_v7, %s2358_s15  ;;  %v1586_v9 = vsel %vm273_vm0, %v1584_v16, %v1585_v7  ;;  %vm3739_vm0 = vcmask 7168  }
 0x390   : > { %1589 = vrot.lane.b32.xlu0 %v1586_v9, %s2358_s15 }
 0x3fd   : > { %v1588_v30 = vpop.permute.xlu1 %1587 }
 0x3fe   : > { %1596 = vst.msk [vmem:[#allocation2] sm:$0xfe] %vm286_vm3, %v1588_v30  ;;  %vm3742_vm3 = vmmov %vm3739_vm0 }
 0x3ff   : > { %1597 = vst.msk [vmem:[#allocation2 + $0x8] sm:$0xfe] %vm288_vm4, %v1588_v30  ;;  %1602 = vst.msk [vmem:[#allocation2] sm:$0xfe] %vm288_vm4, %v2363_v0 }
 0x400   : > { %1605 = vst.msk [vmem:[#allocation2 + $0x8] sm:$0xfe] %vm313_vm6, %v2363_v0  ;;  %vm3744_vm4 = vmmov %vm3734_vm1 }
 0x401   : > { %v1592_v50 = vpop.permute.xlu1 %1591  ;;  %vm3745_vm6 = vmmov %vm3734_vm1 }
 0x402   : > { %1600 = vst.msk [vmem:[#allocation2 + $0x20] sm:$0x1] %vm3736_vm7, %v1592_v50  ;;  %v1590_v44 = vpop.permute.xlu0 %1589 }
 0x403   : > { %1601 = vst.msk [vmem:[#allocation2 + $0x28] sm:$0x1] %vm3737_vm5, %v1592_v50 }
 0x404   : > { %1598 = vst.msk [vmem:[#allocation2 + $0x10] sm:$0xff] %vm3738_vm8, %v1590_v44  ;;  %vm3749_vm8 = vmmov %vm3734_vm1 }
 0x405   : > { %1599 = vst.msk [vmem:[#allocation2 + $0x18] sm:$0xff] %vm3739_vm0, %v1590_v44  ;;  %vm3750_vm0 = vmmov %vm3734_vm1 }
 0x406   : > { %1604 = vst.msk [vmem:[#allocation2 + $0x20] sm:$0x1] %vm3740_vm9, %v2363_v0  ;;  %v3477_v40 = vld [vmem:[#allocation2] sm:$0xff] }
 0x407   : > { %1607 = vst.msk [vmem:[#allocation2 + $0x28] sm:$0x1] %vm3741_vm10, %v2363_v0  ;;  %v1614_v19 = vld [vmem:[#allocation2 + $0x8] sm:$0xff]  ;;  %1620 = vrot.lane.b32.xlu0 %v3477_v40, %s2361_s5  ;;  %v1648_v62 = vld [vmem:[#allocation2] sm:$0xfe] }
 0x408   : > { %1603 = vst.msk [vmem:[#allocation2 + $0x10] sm:$0xff] %vm3742_vm3, %v2363_v0  ;;  %1622 = vrot.lane.b32.xlu1 %v1614_v19, %s2361_s5  ;;  %v1661_v36 = vld [vmem:[#allocation2 + $0x8] sm:$0xfe]  ;;  %v1652_v17 = vrot.slane %v1648_v62, 1  ;;  %v1698_v21 = vld [vmem:[#allocation2] sm:$0xfc] }
 0x409   : > { %1606 = vst.msk [vmem:[#allocation2 + $0x18] sm:$0xff] %vm3743_vm14, %v2363_v0  ;;  %v1665_v18 = vrot.slane %v1661_v36, 1  ;;  %v1711_v12 = vld [vmem:[#allocation2 + $0x8] sm:$0xfc]  ;;  %v1702_v55 = vrot.slane %v1698_v21, 2 }
 0x40a   : > { %v1715_v57 = vrot.slane %v1711_v12, 2 }
 0x40b   : > { %1634 = vrot.lane.b32.xlu0 %v3477_v40, %s2360_s27 }
 0x40c   : > { %1636 = vrot.lane.b32.xlu1 %v1614_v19, %s2360_s27 }
 0x40d   : > { %v1649_v38 = vld [vmem:[#allocation2 + $0x20] sm:$0x1] }
 0x40e   : > { %v1662_v58 = vld [vmem:[#allocation2 + $0x28] sm:$0x1]  ;;  %v1655_v42 = vrot.slane %v1649_v38, 1  ;;  %v1699_v45 = vld [vmem:[#allocation2 + $0x20] sm:$0x3] }
 0x40f   : > { %v3485_v5 = vld [vmem:[#allocation2 + $0x10] sm:$0xff]  ;;  %v1668_v2 = vrot.slane %v1662_v58, 1  ;;  %v1712_v26 = vld [vmem:[#allocation2 + $0x28] sm:$0x3]  ;;  %v1705_v4 = vrot.slane %v1699_v45, 2 }
 0x410   : > { %v1615_v25 = vld [vmem:[#allocation2 + $0x18] sm:$0xff]  ;;  %1624 = vrot.lane.b32.xlu0 %v3485_v5, %s2361_s5  ;;  %v1653_v27 = vrot.slane %v3485_v5, 1  ;;  %v1703_v60 = vrot.slane %v3485_v5, 2  ;;  %v1718_v24 = vrot.slane %v1712_v26, 2 }
 0x411   : > { %1626 = vrot.lane.b32.xlu1 %v1615_v25, %s2361_s5  ;;  %v1666_v51 = vrot.slane %v1615_v25, 1  ;;  %v1716_v63 = vrot.slane %v1615_v25, 2 }
 0x412   : > { %v3496_v11 = vsel %vm356_vm11, %v1652_v17, %v1653_v27  ;;  %v3503_v20 = vsel %vm356_vm11, %v1653_v27, %v1655_v42  ;;  %v1704_v53 = vsel %vm381_vm12, %v1702_v55, %v1703_v60  ;;  %v1706_v22 = vsel %vm381_vm12, %v1703_v60, %v1705_v4 }
 0x413   : > { %v1667_v49 = vsel %vm356_vm11, %v1665_v18, %v1666_v51  ;;  %v1669_v13 = vsel %vm356_vm11, %v1666_v51, %v1668_v2  ;;  %v1717_v43 = vsel %vm381_vm12, %v1715_v57, %v1716_v63  ;;  %v1719_v0 = vsel %vm381_vm12, %v1716_v63, %v1718_v24  ;;  %vm3746_vm11 = vmmov %vm3734_vm1 }
 0x414   : > { %1638 = vrot.lane.b32.xlu0 %v3485_v5, %s2360_s27  ;;  %vm3747_vm12 = vmmov %vm3734_vm1 }
 0x415   : > { %1640 = vrot.lane.b32.xlu1 %v1615_v25, %s2360_s27 }
 0x418   : > { %1670 = vrot.lane.b32.xlu0 %v3496_v11, %s2361_s5 }
 0x419   : > { %1672 = vrot.lane.b32.xlu1 %v1667_v49, %s2361_s5 }
 0x41c   : > { %1674 = vrot.lane.b32.xlu0 %v3503_v20, %s2361_s5 }
 0x41d   : > { %1676 = vrot.lane.b32.xlu1 %v1669_v13, %s2361_s5 }
 0x420   : > { %1684 = vrot.lane.b32.xlu0 %v3496_v11, %s2360_s27 }
 0x421   : > { %1686 = vrot.lane.b32.xlu1 %v1667_v49, %s2360_s27 }
 0x424   : > { %1688 = vrot.lane.b32.xlu0 %v3503_v20, %s2360_s27 }
 0x425   : > { %1690 = vrot.lane.b32.xlu1 %v1669_v13, %s2360_s27 }
 0x428   : > { %1720 = vrot.lane.b32.xlu0 %v1704_v53, %s2361_s5 }
 0x429   : > { %1722 = vrot.lane.b32.xlu1 %v1717_v43, %s2361_s5 }
 0x42c   : > { %1724 = vrot.lane.b32.xlu0 %v1706_v22, %s2361_s5 }
 0x42d   : > { %1726 = vrot.lane.b32.xlu1 %v1719_v0, %s2361_s5 }
 0x430   : > { %1734 = vrot.lane.b32.xlu0 %v1704_v53, %s2360_s27 }
 0x431   : > { %1736 = vrot.lane.b32.xlu1 %v1717_v43, %s2360_s27 }
 0x434   : > { %1738 = vrot.lane.b32.xlu0 %v1706_v22, %s2360_s27 }
 0x435   : > { %1740 = vrot.lane.b32.xlu1 %v1719_v0, %s2360_s27 }
 0x479   : > { %v1621_v15 = vpop.permute.xlu0 %1620 }
 0x47a   : > { %v1623_v61 = vpop.permute.xlu1 %1622 }
 0x47b   : > { %v1628_v46 = vsel %vm436_vm13, %v1621_v15, %v1623_v61  ;;  %v1748_v15 = vld [vmem:[%s233_s10] sm:$0xff] }
 0x47c   : > { %v1632_v35 = vmin.f32 %v3477_v40, %v1628_v46  ;;  %vm1822_vm7 = vcmp.ge.f32.partialorder %v1748_v15, %v3306_v1 }
 0x47d   : > { %v1635_v34 = vpop.permute.xlu0 %1634 }
 0x47e   : > { %v1637_v6 = vpop.permute.xlu1 %1636 }
 0x47f   : > { %v1642_v28 = vsel %vm3744_vm4, %v1635_v34, %v1637_v6 }
 0x480   : > { %v1646_v50 = vmin.f32 %v1632_v35, %v1642_v28 }
 0x482   : > { %v1625_v41 = vpop.permute.xlu0 %1624  ;;  %v1659_v18 = vmin.f32 %v1646_v50, %v3496_v11 }
 0x483   : > { %v1627_v59 = vpop.permute.xlu1 %1626 }
 0x484   : > { %v1629_v30 = vsel %vm436_vm13, %v1625_v41, %v1627_v59 }
 0x485   : > { %v1633_v19 = vmin.f32 %v3485_v5, %v1629_v30 }
 0x486   : > { %v1639_v10 = vpop.permute.xlu0 %1638 }
 0x487   : > { %v1641_v37 = vpop.permute.xlu1 %1640 }
 0x488   : > { %v1643_v44 = vsel %vm3745_vm6, %v1639_v10, %v1641_v37 }
 0x489   : > { %v1647_v51 = vmin.f32 %v1633_v19, %v1643_v44 }
 0x48a   : > { %v1671_v32 = vpop.permute.xlu0 %1670 }
 0x48b   : > { %v1673_v56 = vpop.permute.xlu1 %1672  ;;  %v1660_v49 = vmin.f32 %v1647_v51, %v3503_v20 }
 0x48c   : > { %v1678_v62 = vsel %vm436_vm13, %v1671_v32, %v1673_v56 }
 0x48d   : > { %v1682_v27 = vmin.f32 %v1659_v18, %v1678_v62 }
 0x48e   : > { %v1675_v16 = vpop.permute.xlu0 %1674 }
 0x48f   : > { %v1677_v48 = vpop.permute.xlu1 %1676 }
 0x490   : > { %v1679_v38 = vsel %vm436_vm13, %v1675_v16, %v1677_v48 }
 0x491   : > { %v1683_v5 = vmin.f32 %v1660_v49, %v1679_v38 }
 0x492   : > { %v1685_v9 = vpop.permute.xlu0 %1684 }
 0x493   : > { %v1687_v7 = vpop.permute.xlu1 %1686 }
 0x494   : > { %v1692_v17 = vsel %vm3746_vm11, %v1685_v9, %v1687_v7 }
 0x495   : > { %v1696_v2 = vmin.f32 %v1682_v27, %v1692_v17  ;;  %v2051_v17 = vsel %vm1822_vm7, 1.0, %v2362_v39 }
 0x496   : > { %v1689_v36 = vpop.permute.xlu0 %1688 }
 0x497   : > { %v1691_v25 = vpop.permute.xlu1 %1690  ;;  %v1709_v11 = vmin.f32 %v1696_v2, %v1704_v53 }
 0x498   : > { %v1693_v42 = vsel %vm3747_vm12, %v1689_v36, %v1691_v25 }
 0x499   : > { %v1697_v63 = vmin.f32 %v1683_v5, %v1693_v42 }
 0x49a   : > { %v1721_v58 = vpop.permute.xlu0 %1720 }
 0x49b   : > { %v1723_v40 = vpop.permute.xlu1 %1722  ;;  %v1710_v20 = vmin.f32 %v1697_v63, %v1706_v22  ;;  %v1749_v22 = vld [vmem:[%s233_s10 + $0x8] sm:$0xff]  ;;  %s2256_s10 = scalar_lea.vmem %s2255_s8, 512 }
 0x49c   : > { %v1728_v21 = vsel %vm436_vm13, %v1721_v58, %v1723_v40  ;;  %vm1823_vm5 = vcmp.ge.f32.partialorder %v1749_v22, %v3306_v1  ;;  %p2258_p7 = scmp.lt.s32.totalorder %s2256_s10, %s2250_s7 }
 0x49d   : > { %v1732_v57 = vmin.f32 %v1709_v11, %v1728_v21  ;;  %v2052_v29 = vsel %vm1823_vm5, 1.0, %v2362_v39 }
 0x49e   : > { %v1725_v12 = vpop.permute.xlu0 %1724  ;;  %p2259_p9 = por %p2258_p7, %p2257_p5 }
 0x49f   : > { %v1727_v13 = vpop.permute.xlu1 %1726 }
 0x4a0   : > { %v1729_v26 = vsel %vm436_vm13, %v1725_v12, %v1727_v13  ;;  %vm1774_vm13 = vcmask 1047568   ;;  %p2260_p11 = pnand %p2259_p9, %p2253_p10 }
 0x4a1   : > { %v1733_v24 = vmin.f32 %v1710_v20, %v1729_v26 }
 0x4a2   : > { %v1735_v60 = vpop.permute.xlu0 %1734 }
 0x4a3   : > { %v1737_v55 = vpop.permute.xlu1 %1736 }
 0x4a4   : > { %v1742_v45 = vsel %vm3748_vm15, %v1735_v60, %v1737_v55 }
 0x4a5   : > { %v3542_v43 = vmin.f32 %v1732_v57, %v1742_v45 }
 0x4a6   : > { %v1739_v0 = vpop.permute.xlu0 %1738 }
 0x4a7   : > { %v1741_v4 = vpop.permute.xlu1 %1740  ;;  %1752 = vrot.lane.b32.xlu0 %v3542_v43, %s2359_s23  ;;  %v1828_v33 = vmax.f32 %v2051_v17, %v3542_v43 }
 0x4a8   : > { %v1743_v61 = vsel %vm3734_vm1, %v1739_v0, %v1741_v4 }
 0x4a9   : > { %v3547_v53 = vmin.f32 %v1733_v24, %v1743_v61 }
 0x4ab   : > { %1764 = vrot.lane.b32.xlu0 %v1748_v15, %s2359_s23  ;;  %1754 = vrot.lane.b32.xlu1 %v3547_v53, %s2359_s23  ;;  %v1829_v63 = vmax.f32 %v2052_v29, %v3547_v53 }
 0x4af   : > { %1766 = vrot.lane.b32.xlu1 %v1749_v22, %s2359_s23 }
 0x519   : > { %v1753_v6 = vpop.permute.xlu0 %1752 }
 0x51a   : > { %v1758_v34 = vadd.f32 %v1753_v6, %v3323_v31  ;;  %v1759_v59 = vadd.f32 %v1753_v6, %v3328_v23 }
 0x51d   : > { %v1755_v41 = vpop.permute.xlu1 %1754  ;;  %v1765_v37 = vpop.permute.xlu0 %1764 }
 0x51e   : > { %v3559_v10 = vadd.f32 %v1765_v37, %v1758_v34  ;;  %v3561_v56 = vadd.f32 %v1765_v37, %v1759_v59  ;;  %v1760_v32 = vadd.f32 %v1755_v41, %v3334_v52  ;;  %v1761_v48 = vadd.f32 %v1755_v41, %v3342_v3 }
 0x520   : > { %v1775_v16 = vsel %vm1774_vm13, %v3559_v10, inf  ;;  %v1777_v31 = vsel %vm1776_vm2, %v3561_v56, inf  ;;  %v1793_v7 = vsel %vm1774_vm13, %v3559_v10, -inf  ;;  %v1794_v9 = vsel %vm1776_vm2, %v3561_v56, -inf }
 0x521   : > { %v1767_v46 = vpop.permute.xlu1 %1766  ;;  %v1778_v23 = vmin.f32 %v1775_v16, %v1777_v31  ;;  %v1795_v50 = vmax.f32 %v1793_v7, %v1794_v9 }
 0x522   : > { %v1772_v28 = vadd.f32 %v1767_v46, %v1760_v32  ;;  %v3569_v35 = vadd.f32 %v1767_v46, %v1761_v48 }
 0x523   : > { %1779 = vmin.xlane.f32.xlu0 %v1778_v23 }
 0x524   : > { %v1781_v52 = vsel %vm1774_vm13, %v1772_v28, inf  ;;  %v1782_v3 = vsel %vm1776_vm2, %v3569_v35, inf  ;;  %v1798_v44 = vsel %vm1774_vm13, %v1772_v28, -inf  ;;  %v1799_v19 = vsel %vm1776_vm2, %v3569_v35, -inf }
 0x525   : > { %v1783_v30 = vmin.f32 %v1781_v52, %v1782_v3  ;;  %v1800_v25 = vmax.f32 %v1798_v44, %v1799_v19 }
 0x527   : > { %1784 = vmin.xlane.f32.xlu1 %v1783_v30  ;;  %1796 = vmax.xlane.f32.xlu0 %v1795_v50 }
 0x52b   : > { %1801 = vmax.xlane.f32.xlu0 %v1800_v25 }
 0x538   : > { %2147 = vrot.lane.b32.xlu1 %v2146_v8, %s2360_s27 }
 0x541   : > { %2152 = vrot.lane.b32.xlu0 %v2151_v14, %s2360_s27 }
 0x5b0   : > { %v1780_v36 = vpop.xlane.xlu0 %1779 }
 0x5b4   : > { %v1785_v62 = vpop.xlane.xlu1 %1784  ;;  %v1797_v51 = vpop.xlane.xlu0 %1796 }
 0x5b5   : > { %v1786_v18 = vmin.f32 %v1780_v36, %v1785_v62 }
 0x5b7   : > { %v1787_v27 = vrot.slane %v1786_v18, 4 }
 0x5b8   : > { %v2148_v40 = vpop.permute.xlu1 %2147  ;;  %v1802_v58 = vpop.xlane.xlu0 %1801 }
 0x5b9   : > { %v1788_v54 = vmin.f32 %v1786_v18, %v1787_v27  ;;  %v2150_v47 = vunpack.i.h.bf16 %v2148_v40  ;;  %v2149_v8 = vunpack.i.l.bf16 %v2148_v40  ;;  %v1803_v38 = vmax.f32 %v1797_v51, %v1802_v58 }
 0x5bb   : > { %v1789_v14 = vrot.slane %v1788_v54, 2  ;;  %v1838_v49 = vsel %vm3749_vm8, %v2149_v8, %v2150_v47  ;;  %v1804_v2 = vrot.slane %v1803_v38, 4 }
 0x5bc   : > { %v1842_v42 = vmax.f32 %v1828_v33, %v1838_v49  ;;  %v2153_v5 = vpop.permute.xlu0 %2152 }
 0x5bd   : > { %v1790_v13 = vmin.f32 %v1788_v54, %v1789_v14  ;;  %v1805_v12 = vmax.f32 %v1803_v38, %v1804_v2  ;;  %v2155_v1 = vunpack.i.h.bf16 %v2153_v5  ;;  %v2154_v21 = vunpack.i.l.bf16 %v2153_v5 }
 0x5be   : > { %1862 = vst [vmem:[%s267_s14] sm:$0xff] %v1842_v42 }
 0x5bf   : > { %v1806_v11 = vrot.slane %v1805_v12, 2  ;;  %v1839_v57 = vsel %vm3750_vm0, %v2154_v21, %v2155_v1  ;;  %v1791_v39 = vrot.slane %v1790_v13, 1 }
 0x5c0   : > { %v1843_v55 = vmax.f32 %v1829_v63, %v1839_v57 }
 0x5c1   : > { %v1807_v60 = vmax.f32 %v1805_v12, %v1806_v11  ;;  %v1792_v45 = vmin.f32 %v1790_v13, %v1791_v39 }
 0x5c2   : > { %1863 = vst [vmem:[%s267_s14 + $0x8] sm:$0xff] %v1843_v55 }
 0x5c3   : > { %v1808_v26 = vrot.slane %v1807_v60, 1  ;;  %v1812_v4 = vsub.f32 %v1772_v28, %v1792_v45  ;;  %v1810_v0 = vsub.f32 %v3559_v10, %v1792_v45  ;;  %v1811_v22 = vsub.f32 %v3561_v56, %v1792_v45 }
 0x5c5   : > { %v1809_v20 = vmax.f32 %v1807_v60, %v1808_v26 }
 0x5c7   : > { %v1814_v43 = vsub.f32 %v1809_v20, %v1792_v45 }
 0x5c9   : > { %v1815_v24 = vadd.f32 1e-06, %v1814_v43 }
 0x5cb   : > { %2188 = vrcp.f32 %v1815_v24 }
 0x5d5   : > { %v2189_v61 = vpop.eup %2188 }
 0x5d6   : > { %v1820_v53 = vmul.f32 %v2189_v61, %v1812_v4  ;;  %v1818_v15 = vmul.f32 %v2189_v61, %v1810_v0 }
 0x5d8   : > { %1852 = vrot.lane.b32.xlu0 %v1820_v53, %s2360_s27  ;;  %1848 = vrot.lane.b32.xlu1 %v1818_v15, %s2360_s27 }
 0x5d9   : > { %2263 = shalt.err (!%p2260_p11)
}
 0x5da   : > { %s2264_s15 = scalar_lea.hbm %s3605_s26, 256  ;;  %s2268_s9 = scalar_lea.hbm %s3703_s4, 512 }
 0x5db   : > { %p2265_p3 = scmp.ne.s32.totalorder %s3605_s26, %s2264_s15  ;;  %p2269_p2 = scmp.lt.u32.totalorder %s3605_s26, %s3703_s4 }
 0x5dc   : > { %p2270_p4 = scmp.lt.u32.totalorder %s2268_s9, %s2264_s15  ;;  %p2272_p13 = scmp.lt.u32.totalorder %s2264_s15, %s3605_s26 }
 0x5dd   : > { %p2266_p8 = pnand %p2265_p3, %p3751_p1 }
 0x5de   : > { %p2271_p6 = por %p2270_p4, %p2269_p2 }
 0x5df   : > { %p2267_p0 = pneg %p2266_p8 }
 0x5e0   : > { %p2273_p12 = por %p2272_p13, %p2271_p6 }
 0x5e2   : > { %p2274_p10 = pnand %p2273_p12, %p2267_p0 }
 0x5e4   : > { %2277 = shalt.err (!%p2274_p10)
}
 0x5e5   : > { %s2365_s24 = smov 128   ;;  %s2366_s7 = smov 8   ;;  %v1819_v6 = vmul.f32 %v2189_v61, %v1811_v22  ;;  %v1813_v34 = vsub.f32 %v3569_v35, %v1792_v45  ;;  %vm3752_vm9 = vmmov %vm3750_vm0 }
 0x5e6   : > { %2070 = dma.vmem_to_hbm [thread:$0]  (%p3751_p1), %s3610_s13, 256, %s3605_s26, %s1870_s6, %s2365_s24, %s2365_s24, %s2366_s7   ;;  %vm3753_vm10 = vmmov %vm3750_vm0 }
 0x5e7   : > { %1850 = vrot.lane.b32.xlu1 %v1819_v6, %s2360_s27  ;;  %v1821_v59 = vmul.f32 %v2189_v61, %v1813_v34  ;;  %s260_s12 = scalar_lea.vmem [#allocation9], %s2561_s30  ;;  %s1865_s30 = scalar_lea.sflag [#allocation6], %s2550_s11 }
 0x5e8   : > { %s1883_s8 = sshll.u32 %s260_s12, 4  ;;  %s2367_s10 = smov [#allocation9]   ;;  %s3644_s8 = int_to_ptr.vmem [resolvable:$true] %s1883_s8 }
 0x5e9   : > { %s2278_s6 = scalar_lea.vmem %s3644_s8, 256  ;;  %s2282_s15 = sshll.u32 %s2367_s10, 4  ;;  %s2283_s15 = int_to_ptr.vmem [resolvable:$false] %s2282_s15 }
 0x5ea   : > { %p2279_p5 = scmp.ne.s32.totalorder %s3644_s8, %s2278_s6  ;;  %s2284_s23 = scalar_lea.vmem %s2283_s15, 512 }
 0x5eb   : > { %1854 = vrot.lane.b32.xlu1 %v1821_v59, %s2360_s27  ;;  %s3651_s27 = scalar_lea.hbm %s3702_s3, %s2063_s16  ;;  %p2285_p11 = scmp.lt.s32.totalorder %s3644_s8, %s2283_s15 }
 0x5ec   : > { %p2280_p7 = pnand %p2279_p5, %p3751_p1  ;;  %p2286_p3 = scmp.lt.s32.totalorder %s2284_s23, %s2278_s6 }
 0x5ee   : > { %p2281_p9 = pneg %p2280_p7  ;;  %p2287_p8 = por %p2286_p3, %p2285_p11 }
 0x5f0   : > { %p2288_p0 = pnand %p2287_p8, %p2281_p9 }
 0x64a   : > { %v1849_v41 = vpop.permute.xlu1 %1848  ;;  %v1853_v56 = vpop.permute.xlu0 %1852 }
 0x659   : > { %v1851_v37 = vpop.permute.xlu1 %1850 }
 0x65a   : > { %v1856_v10 = vsel %vm3752_vm9, %v1849_v41, %v1851_v37 }
 0x65b   : > { %1860 = vst [vmem:[%s260_s12] sm:$0xff] %v1856_v10 }
 0x65d   : > { %v1855_v32 = vpop.permute.xlu1 %1854 }
 0x65e   : > { %v1857_v48 = vsel %vm3753_vm10, %v1853_v56, %v1855_v32 }
 0x65f   : > { %1861 = vst [vmem:[%s260_s12 + $0x8] sm:$0xff] %v1857_v48 }
 0x660   : > { %2291 = shalt.err (!%p2288_p0)
}
 0x661   : > { %s2292_s0 = scalar_lea.hbm %s3651_s27, 256  ;;  %s2296_s9 = scalar_lea.hbm %s3702_s3, 512 }
 0x662   : > { %p2293_p2 = scmp.ne.s32.totalorder %s3651_s27, %s2292_s0  ;;  %p2297_p13 = scmp.lt.u32.totalorder %s3651_s27, %s3702_s3 }
 0x663   : > { %p2298_p12 = scmp.lt.u32.totalorder %s2296_s9, %s2292_s0  ;;  %p2300_p5 = scmp.lt.u32.totalorder %s2292_s0, %s3651_s27 }
 0x664   : > { %p2294_p4 = pnand %p2293_p2, %p3751_p1 }
 0x665   : > { %p2299_p10 = por %p2298_p12, %p2297_p13 }
 0x666   : > { %p2295_p6 = pneg %p2294_p4 }
 0x667   : > { %p2301_p7 = por %p2300_p5, %p2299_p10 }
 0x669   : > { %p2302_p9 = pnand %p2301_p7, %p2295_p6 }
 0x66b   : > { %2305 = shalt.err (!%p2302_p9)
}
 0x66c   : > { %2069 = dma.vmem_to_hbm [thread:$0]  (%p3751_p1), %s3644_s8, 256, %s3651_s27, %s1865_s30, %s2365_s24, %s2365_s24, %s2366_s7  }
 0x66d PF: > { %s1914_s12 = sand.u32 1, %s2340_s17   ;;  %p3754_p11 = scmp.ne.s32.totalorder %s3716_s29, 0 }
 0x66e   : > { %p3755_p3 = scmp.ge.s32.totalorder %s2352_s20, 2  ;;  %s1915_s26 = scalar_lea.sflag [#allocation6], %s1914_s12 }
 0x670   : > { %p2081_p8 = pnand %p3755_p3, %p3754_p11 }
 0x672   : > { %2331 = dma.done.wait (!%p2081_p8), %s1915_s26, 256  }
 0x673   : > { %2333 = vsyncadd (!%p2081_p8), %s1915_s26, 4294967040  ;;  %s1924_s28 = scalar_lea.sflag [#allocation11], %s1914_s12 }
 0x674   : > { %2335 = dma.done.wait (!%p2081_p8), %s1924_s28, 256  }
 0x675   : > { %2337 = vsyncadd (!%p2081_p8), %s1924_s28, 4294967040  ;;  %p25_p1 = scmp.ge.s32.totalorder %s2421_s22, 4   ;;  %s3756_s17 = smov %s2344_s18 }
 0x676   : > { %s3757_s18 = smov %s2348_s19  ;;  %s3758_s19 = smov %s2433_s25 }
 0x677   : > { %s3759_s20 = smov %s2421_s22  ;;  %27 = sbr.rel (!%p25_p1) target bundleno = 11 (0xb), region = 113 }
 0x67e   :  { %1929 = vsyncpa [#allocation5], 1 }
 0x67f   :  { %1931 = vsyncpa [#allocation5 + $0x1], 1 }
 0x680   :  { %1932 = vsyncpa [#allocation8], 1 }
 0x681   :  { %1934 = vsyncpa [#allocation8 + $0x1], 1 }
 0x682   :  { %1935 = vsyncpa [#allocation6], 1 }
 0x683   :  { %1937 = vsyncpa [#allocation6 + $0x1], 1 }
 0x684   :  { %1938 = vsyncpa [#allocation11], 1 }
 0x685   :  { %1940 = vsyncpa [#allocation11 + $0x1], 1 }

</bundles_post_ra>
